<compile_context>
chip_gen: v6e
topology: v6e:2x2x1
jax: 0.10.0
libtpu: 0.0.40
codegen_flags: <defaults>
</compile_context>

<pallas_src>
import jax
import jax.numpy as jnp
from jax.experimental import pallas as pl
from jax.experimental.pallas import tpu as pltpu


# ----------------------------------------------------------------------------
# Small helpers
# ----------------------------------------------------------------------------
def _cdiv(a, b):
    return -(-a // b)


def _round_up(x, m):
    return _cdiv(x, m) * m


def _block_and_pad(m, tile):
    """128-aligned block <= tile and padded extent; >=2 steps for big work."""
    m128 = _round_up(m, 128)
    steps = _cdiv(m128, tile)
    if steps == 1 and m128 >= 2048:
        steps = 2                 # enough work: use both v7x TensorCores
    block = _round_up(_cdiv(m128, steps), 128)
    return block, block * steps   # padded extent is a multiple of block (and 128)


# ----------------------------------------------------------------------------
# Pallas kernels
# ----------------------------------------------------------------------------
def conv_relu_pool_kernel(w_ref, b_ref, s_ref, o_ref):
    """Fused conv-as-matmul + bias + ReLU + 2x2/2 max-pool.

    w_ref : (OCp, Kp)        bf16  conv weight rows (zero-padded OC / K)
    b_ref : (OCp, 1)         f32   bias column (zero-padded OC)
    s_ref : (4, Kp, TM)      bf16  stacked im2col slabs, one per pool offset
    o_ref : (OCp, TM)        bf16  pooled activation, lane-dense over M
    """
    w = w_ref[...]
    acc = jnp.dot(w, s_ref[0], preferred_element_type=jnp.float32)
    acc = jnp.maximum(acc, jnp.dot(w, s_ref[1],
                                   preferred_element_type=jnp.float32))
    acc = jnp.maximum(acc, jnp.dot(w, s_ref[2],
                                   preferred_element_type=jnp.float32))
    acc = jnp.maximum(acc, jnp.dot(w, s_ref[3],
                                   preferred_element_type=jnp.float32))
    # relu(max_k(conv_k) + b) == pool(relu(conv + b)): bias is per-channel,
    # ReLU is monotonic.  Re-check if pooling or activation ever changes.
    acc = acc + b_ref[...]
    o_ref[...] = jnp.maximum(acc, 0.0).astype(o_ref.dtype)


def fc_stack_kernel(x_ref, w1_ref, b1_ref, w2_ref, b2_ref, w3_ref, b3_ref,
                    o_ref):
    """fc1 -> ReLU -> fc2 -> ReLU -> fc3 fused; bf16 matmuls, f32 accumulate."""
    h = jnp.dot(x_ref[...], w1_ref[...],
                preferred_element_type=jnp.float32) + b1_ref[...]
    h = jnp.maximum(h, 0.0).astype(jnp.bfloat16)
    h = jnp.dot(h, w2_ref[...],
                preferred_element_type=jnp.float32) + b2_ref[...]
    h = jnp.maximum(h, 0.0).astype(jnp.bfloat16)
    o_ref[...] = (jnp.dot(h, w3_ref[...],
                          preferred_element_type=jnp.float32)
                  + b3_ref[...]).astype(o_ref.dtype)


# ----------------------------------------------------------------------------
# XLA-glue: pool-offset im2col slabs built directly in (4, Kp, Mp) bf16
# ----------------------------------------------------------------------------
def _pool_patch_slabs(a, kh, kw, kp, mp):
    """a: (C, N, H, W) bf16 channel-major activation.

    Returns slabs (4, Kp, Mp) bf16 where
      slabs[2*di+dj, c*kh*kw + ki*kw + kj, n*POH*POW + py*POW + px]
        = a[c, n, 2*py + di + ki, 2*px + dj + kj]
    (K zero-padded to kp, M zero-padded to mp).  No transposes: channel /
    kernel axes are kept leading so the reshape lands in (K, M) directly.
    """
    c, n, h, w = a.shape
    oh, ow = h - kh + 1, w - kw + 1
    poh, pow_ = oh // 2, ow // 2
    m = n * poh * pow_
    k = c * kh * kw
    slabs = []
    for di in range(2):
        for dj in range(2):
            cols = [
                a[:, :,
                  di + ki: di + ki + 2 * poh: 2,
                  dj + kj: dj + kj + 2 * pow_: 2]      # (C, N, POH, POW)
                for ki in range(kh) for kj in range(kw)
            ]
            s = jnp.stack(cols, axis=1)                # (C, KH*KW, N, POH, POW)
            slabs.append(s.reshape(k, m))              # (K, M) — no .T
    s4 = jnp.stack(slabs, axis=0)                      # (4, K, M)
    return jnp.pad(s4, ((0, 0), (0, kp - k), (0, mp - m)))


# ----------------------------------------------------------------------------
# Layer wrappers
# ----------------------------------------------------------------------------
def conv_relu_pool(a, w_pad, b_col, out_channels, *, tm=2048):
    """Conv2d(5x5, valid) + bias + ReLU + 2x2/2 max-pool, channel-major.

    a     : (C, N, H, W) bf16 channel-major activation.
    w_pad : (OCp, Kp) bf16 pre-padded weight;  b_col: (OCp, 1) f32.
    Returns (out_channels, N, POH, POW) bf16 (still channel-major).
    """
    c, n, h, w = a.shape
    kh = kw = 5
    ocp, kp = w_pad.shape
    oh, ow = h - kh + 1, w - kw + 1
    poh, pow_ = oh // 2, ow // 2
    m = n * poh * pow_

    block_m, mp = _block_and_pad(m, tm)
    slabs = _pool_patch_slabs(a, kh, kw, kp, mp)       # (4, Kp, Mp) bf16
    grid = (mp // block_m,)

    pooled = pl.pallas_call(
        conv_relu_pool_kernel,
        out_shape=jax.ShapeDtypeStruct((ocp, mp), jnp.bfloat16),
        grid=grid,
        in_specs=[
            pl.BlockSpec((ocp, kp), lambda i: (0, 0)),          # weights (resident)
            pl.BlockSpec((ocp, 1), lambda i: (0, 0)),           # bias
            pl.BlockSpec((4, kp, block_m), lambda i: (0, 0, i)),  # stacked slabs
        ],
        out_specs=pl.BlockSpec((ocp, block_m), lambda i: (0, i)),
        compiler_params=pltpu.CompilerParams(
            dimension_semantics=("parallel",)),
    )(w_pad, b_col, slabs)

    pooled = pooled[:out_channels, :m]                 # drop OC / M padding
    return pooled.reshape(out_channels, n, poh, pow_)  # channel-major, no transpose


def fc_stack(x, w1, b1, w2, b2, w3, b3, *, out_features=10, tn=1024):
    """Fused fc1/fc2/fc3 (+ReLUs).  x: (N, 400) bf16 -> (N, out_features) f32."""
    n, k = x.shape
    h3 = w3.shape[1]
    block_n, n_pad = _block_and_pad(n, tn)
    if n_pad != n:
        x = jnp.pad(x, ((0, n_pad - n), (0, 0)))
    grid = (n_pad // block_n,)

    out = pl.pallas_call(
        fc_stack_kernel,
        out_shape=jax.ShapeDtypeStruct((n_pad, h3), jnp.float32),
        grid=grid,
        in_specs=[
            pl.BlockSpec((block_n, k), lambda i: (i, 0)),
            pl.BlockSpec(w1.shape, lambda i: (0, 0)),
            pl.BlockSpec(b1.shape, lambda i: (0, 0)),
            pl.BlockSpec(w2.shape, lambda i: (0, 0)),
            pl.BlockSpec(b2.shape, lambda i: (0, 0)),
            pl.BlockSpec(w3.shape, lambda i: (0, 0)),
            pl.BlockSpec(b3.shape, lambda i: (0, 0)),
        ],
        out_specs=pl.BlockSpec((block_n, h3), lambda i: (i, 0)),
        compiler_params=pltpu.CompilerParams(
            dimension_semantics=("parallel",)),
    )(x, w1, b1, w2, b2, w3, b3)
    return out[:n, :out_features]


# ----------------------------------------------------------------------------
# Parameters
# ----------------------------------------------------------------------------
def init_params(key):
    keys = jax.random.split(key, 10)

    def u(k, shape, fan_in):
        bound = 1.0 / jnp.sqrt(fan_in)
        return jax.random.uniform(k, shape, jnp.float32, -bound, bound)

    return {
        "conv1_w": u(keys[0], (6, 1, 5, 5), 1 * 5 * 5),
        "conv1_b": u(keys[1], (6,), 1 * 5 * 5),
        "conv2_w": u(keys[2], (16, 6, 5, 5), 6 * 5 * 5),
        "conv2_b": u(keys[3], (16,), 6 * 5 * 5),
        "fc1_w":   u(keys[4], (120, 16 * 5 * 5), 16 * 5 * 5),
        "fc1_b":   u(keys[5], (120,), 16 * 5 * 5),
        "fc2_w":   u(keys[6], (84, 120), 120),
        "fc2_b":   u(keys[7], (84,), 120),
        "fc3_w":   u(keys[8], (10, 84), 84),
        "fc3_b":   u(keys[9], (10,), 84),
    }


def prepare_params(p):
    """One-time layout prep: reshape / transpose / zero-pad / cast weights."""
    def conv_prep(w, b, ocp, kp):
        oc, c, kh, kw = w.shape
        wm = w.reshape(oc, c * kh * kw)                 # PyTorch (C,KH,KW) flatten
        wm = jnp.pad(wm, ((0, ocp - oc), (0, kp - c * kh * kw)))
        bc = jnp.pad(b, (0, ocp - oc)).reshape(ocp, 1)
        return wm.astype(jnp.bfloat16), bc.astype(jnp.float32)

    def fc_prep(w, b, kpad, npad):
        # PyTorch Linear stores (out, in); kernel wants (in, out), zero-padded.
        out_f, in_f = w.shape
        wm = jnp.pad(w.T, ((0, kpad - in_f), (0, npad - out_f)))
        bv = jnp.pad(b, (0, npad - out_f)).reshape(1, npad)
        return wm.astype(jnp.bfloat16), bv.astype(jnp.float32)

    # conv1 OCp padded to 16 (bf16 sublane tile) -- padded channels are zero.
    c1w, c1b = conv_prep(p["conv1_w"], p["conv1_b"], ocp=16, kp=32)
    c2w, c2b = conv_prep(p["conv2_w"], p["conv2_b"], ocp=16, kp=160)
    f1w, f1b = fc_prep(p["fc1_w"], p["fc1_b"], kpad=400, npad=128)
    f2w, f2b = fc_prep(p["fc2_w"], p["fc2_b"], kpad=128, npad=128)
    f3w, f3b = fc_prep(p["fc3_w"], p["fc3_b"], kpad=128, npad=128)
    return {"c1_w": c1w, "c1_b": c1b, "c2_w": c2w, "c2_b": c2b,
            "f1_w": f1w, "f1_b": f1b, "f2_w": f2w, "f2_b": f2b,
            "f3_w": f3w, "f3_b": f3b}


# ----------------------------------------------------------------------------
# Full Net forward
# ----------------------------------------------------------------------------
@jax.jit
def net_forward(prep, x):
    # x: (N, 1, 32, 32) NCHW, f32
    n = x.shape[0]
    # bf16, channel-major (C, N, H, W); for C=1 the transpose is trivial.
    a = x.astype(jnp.bfloat16).transpose(1, 0, 2, 3)            # (1, N, 32, 32)
    a = conv_relu_pool(a, prep["c1_w"], prep["c1_b"], 6)        # (6, N, 14, 14) bf16
    a = conv_relu_pool(a, prep["c2_w"], prep["c2_b"], 16)       # (16, N, 5, 5) bf16
    # Tiny transpose to PyTorch's (N, C*H*W) flatten order for fc1.
    xf = a.transpose(1, 0, 2, 3).reshape(n, 16 * 5 * 5)         # (N, 400) bf16
    return fc_stack(xf, prep["f1_w"], prep["f1_b"],
                    prep["f2_w"], prep["f2_b"],
                    prep["f3_w"], prep["f3_b"], out_features=10)


if __name__ == "__main__":
    key = jax.random.PRNGKey(0)
    pkey, xkey = jax.random.split(key)
    params = init_params(pkey)
    prep = prepare_params(params)
    # LeNet forward requires 32x32 single-channel input (16*5*5 flatten).
    x = jax.random.normal(xkey, (2, 1, 32, 32), dtype=jnp.float32)
    out = net_forward(prep, x)
    out = jax.block_until_ready(out)
    assert out.shape == (2, 10) and out.dtype == jnp.float32
    print("KERNEL_OK")
</pallas_src>

<mosaic_0001>
module attributes {stable_mosaic.version = 11 : i64} {
  func.func @conv_relu_pool_kernel(%arg0: i32, %arg1: memref<16x32xbf16, #tpu.memory_space<vmem>>, %arg2: memref<16x1xf32, #tpu.memory_space<vmem>>, %arg3: memref<4x32x512xbf16, #tpu.memory_space<vmem>>, %arg4: memref<16x512xbf16, #tpu.memory_space<vmem>>) attributes {dimension_semantics = [#tpu.dimension_semantics<parallel>], iteration_bounds = array<i64: 1>, scalar_prefetch = 0 : i64, scratch_operands = 0 : i64, tpu.core_type = #tpu.core_type<tc>, window_params = [{pipeline_mode = #tpu.pipeline_mode<synchronous>, transform_indices = @transform_0, window_bounds = array<i64: 16, 32>}, {pipeline_mode = #tpu.pipeline_mode<synchronous>, transform_indices = @transform_1, window_bounds = array<i64: 16, 1>}, {transform_indices = @transform_2, window_bounds = array<i64: 4, 32, 512>}, {transform_indices = @transform_3, window_bounds = array<i64: 16, 512>}]} {
    %c0 = arith.constant 0 : index
    %c0_0 = arith.constant 0 : index
    %0 = vector.load %arg1[%c0, %c0_0] : memref<16x32xbf16, #tpu.memory_space<vmem>>, vector<16x32xbf16>
    %c0_1 = arith.constant 0 : index
    %c0_2 = arith.constant 0 : index
    %c0_3 = arith.constant 0 : index
    %1 = vector.load %arg3[%c0_1, %c0_2, %c0_3] : memref<4x32x512xbf16, #tpu.memory_space<vmem>>, vector<1x32x512xbf16>
    %2 = vector.shape_cast %1 : vector<1x32x512xbf16> to vector<32x512xbf16>
    %cst = arith.constant dense<0.000000e+00> : vector<16x512xf32>
    %3 = tpu.matmul %0, %2, %cst {dimension_numbers = #tpu.dot_dimension_numbers<[1], [0], [0], [1], [0, 0, 1, 1], [], []>} : vector<16x32xbf16>, vector<32x512xbf16>, vector<16x512xf32> -> vector<16x512xf32>
    %c1 = arith.constant 1 : index
    %c0_4 = arith.constant 0 : index
    %c0_5 = arith.constant 0 : index
    %4 = vector.load %arg3[%c1, %c0_4, %c0_5] : memref<4x32x512xbf16, #tpu.memory_space<vmem>>, vector<1x32x512xbf16>
    %5 = vector.shape_cast %4 : vector<1x32x512xbf16> to vector<32x512xbf16>
    %cst_6 = arith.constant dense<0.000000e+00> : vector<16x512xf32>
    %6 = tpu.matmul %0, %5, %cst_6 {dimension_numbers = #tpu.dot_dimension_numbers<[1], [0], [0], [1], [0, 0, 1, 1], [], []>} : vector<16x32xbf16>, vector<32x512xbf16>, vector<16x512xf32> -> vector<16x512xf32>
    %7 = arith.maximumf %3, %6 : vector<16x512xf32>
    %c2 = arith.constant 2 : index
    %c0_7 = arith.constant 0 : index
    %c0_8 = arith.constant 0 : index
    %8 = vector.load %arg3[%c2, %c0_7, %c0_8] : memref<4x32x512xbf16, #tpu.memory_space<vmem>>, vector<1x32x512xbf16>
    %9 = vector.shape_cast %8 : vector<1x32x512xbf16> to vector<32x512xbf16>
    %cst_9 = arith.constant dense<0.000000e+00> : vector<16x512xf32>
    %10 = tpu.matmul %0, %9, %cst_9 {dimension_numbers = #tpu.dot_dimension_numbers<[1], [0], [0], [1], [0, 0, 1, 1], [], []>} : vector<16x32xbf16>, vector<32x512xbf16>, vector<16x512xf32> -> vector<16x512xf32>
    %11 = arith.maximumf %7, %10 : vector<16x512xf32>
    %c3 = arith.constant 3 : index
    %c0_10 = arith.constant 0 : index
    %c0_11 = arith.constant 0 : index
    %12 = vector.load %arg3[%c3, %c0_10, %c0_11] : memref<4x32x512xbf16, #tpu.memory_space<vmem>>, vector<1x32x512xbf16>
    %13 = vector.shape_cast %12 : vector<1x32x512xbf16> to vector<32x512xbf16>
    %cst_12 = arith.constant dense<0.000000e+00> : vector<16x512xf32>
    %14 = tpu.matmul %0, %13, %cst_12 {dimension_numbers = #tpu.dot_dimension_numbers<[1], [0], [0], [1], [0, 0, 1, 1], [], []>} : vector<16x32xbf16>, vector<32x512xbf16>, vector<16x512xf32> -> vector<16x512xf32>
    %15 = arith.maximumf %11, %14 : vector<16x512xf32>
    %c0_13 = arith.constant 0 : index
    %c0_14 = arith.constant 0 : index
    %16 = vector.load %arg2[%c0_13, %c0_14] : memref<16x1xf32, #tpu.memory_space<vmem>>, vector<16x1xf32>
    %17 = vector.broadcast %16 : vector<16x1xf32> to vector<16x512xf32>
    %18 = arith.addf %15, %17 : vector<16x512xf32>
    %cst_15 = arith.constant 0.000000e+00 : f32
    %19 = vector.broadcast %cst_15 : f32 to vector<16x512xf32>
    %20 = arith.maximumf %18, %19 : vector<16x512xf32>
    %21 = arith.truncf %20 : vector<16x512xf32> to vector<16x512xbf16>
    %c0_16 = arith.constant 0 : index
    %c0_17 = arith.constant 0 : index
    %22 = vector.load %arg4[%c0_16, %c0_17] : memref<16x512xbf16, #tpu.memory_space<vmem>>, vector<16x512xbf16>
    tpu.vector_store %arg4[%c0_16, %c0_17], %21 {strides = array<i32>} : memref<16x512xbf16, #tpu.memory_space<vmem>>, vector<16x512xbf16>,
    return
  }
  func.func @transform_0(%arg0: i32) -> (i32, i32) {
    %c0_i32 = arith.constant 0 : i32
    %c0_i32_0 = arith.constant 0 : i32
    %c0_i32_1 = arith.constant 0 : i32
    return %c0_i32, %c0_i32_0 : i32, i32
  }
  func.func @transform_1(%arg0: i32) -> (i32, i32) {
    %c0_i32 = arith.constant 0 : i32
    %c0_i32_0 = arith.constant 0 : i32
    %c0_i32_1 = arith.constant 0 : i32
    return %c0_i32, %c0_i32_0 : i32, i32
  }
  func.func @transform_2(%arg0: i32) -> (i32, i32, i32) {
    %c0_i32 = arith.constant 0 : i32
    %c0_i32_0 = arith.constant 0 : i32
    %c0_i32_1 = arith.constant 0 : i32
    return %c0_i32, %c0_i32_0, %arg0 : i32, i32, i32
  }
  func.func @transform_3(%arg0: i32) -> (i32, i32) {
    %c0_i32 = arith.constant 0 : i32
    %c0_i32_0 = arith.constant 0 : i32
    return %c0_i32, %arg0 : i32, i32
  }
}

module attributes {stable_mosaic.version = 11 : i64} {
  func.func @conv_relu_pool_kernel(%arg0: i32, %arg1: memref<16x160xbf16, #tpu.memory_space<vmem>>, %arg2: memref<16x1xf32, #tpu.memory_space<vmem>>, %arg3: memref<4x160x128xbf16, #tpu.memory_space<vmem>>, %arg4: memref<16x128xbf16, #tpu.memory_space<vmem>>) attributes {dimension_semantics = [#tpu.dimension_semantics<parallel>], iteration_bounds = array<i64: 1>, scalar_prefetch = 0 : i64, scratch_operands = 0 : i64, tpu.core_type = #tpu.core_type<tc>, window_params = [{pipeline_mode = #tpu.pipeline_mode<synchronous>, transform_indices = @transform_0, window_bounds = array<i64: 16, 160>}, {pipeline_mode = #tpu.pipeline_mode<synchronous>, transform_indices = @transform_1, window_bounds = array<i64: 16, 1>}, {transform_indices = @transform_2, window_bounds = array<i64: 4, 160, 128>}, {transform_indices = @transform_3, window_bounds = array<i64: 16, 128>}]} {
    %c0 = arith.constant 0 : index
    %c0_0 = arith.constant 0 : index
    %0 = vector.load %arg1[%c0, %c0_0] : memref<16x160xbf16, #tpu.memory_space<vmem>>, vector<16x160xbf16>
    %c0_1 = arith.constant 0 : index
    %c0_2 = arith.constant 0 : index
    %c0_3 = arith.constant 0 : index
    %1 = vector.load %arg3[%c0_1, %c0_2, %c0_3] : memref<4x160x128xbf16, #tpu.memory_space<vmem>>, vector<1x160x128xbf16>
    %2 = vector.shape_cast %1 : vector<1x160x128xbf16> to vector<160x128xbf16>
    %cst = arith.constant dense<0.000000e+00> : vector<16x128xf32>
    %3 = tpu.matmul %0, %2, %cst {dimension_numbers = #tpu.dot_dimension_numbers<[1], [0], [0], [1], [0, 0, 1, 1], [], []>} : vector<16x160xbf16>, vector<160x128xbf16>, vector<16x128xf32> -> vector<16x128xf32>
    %c1 = arith.constant 1 : index
    %c0_4 = arith.constant 0 : index
    %c0_5 = arith.constant 0 : index
    %4 = vector.load %arg3[%c1, %c0_4, %c0_5] : memref<4x160x128xbf16, #tpu.memory_space<vmem>>, vector<1x160x128xbf16>
    %5 = vector.shape_cast %4 : vector<1x160x128xbf16> to vector<160x128xbf16>
    %cst_6 = arith.constant dense<0.000000e+00> : vector<16x128xf32>
    %6 = tpu.matmul %0, %5, %cst_6 {dimension_numbers = #tpu.dot_dimension_numbers<[1], [0], [0], [1], [0, 0, 1, 1], [], []>} : vector<16x160xbf16>, vector<160x128xbf16>, vector<16x128xf32> -> vector<16x128xf32>
    %7 = arith.maximumf %3, %6 : vector<16x128xf32>
    %c2 = arith.constant 2 : index
    %c0_7 = arith.constant 0 : index
    %c0_8 = arith.constant 0 : index
    %8 = vector.load %arg3[%c2, %c0_7, %c0_8] : memref<4x160x128xbf16, #tpu.memory_space<vmem>>, vector<1x160x128xbf16>
    %9 = vector.shape_cast %8 : vector<1x160x128xbf16> to vector<160x128xbf16>
    %cst_9 = arith.constant dense<0.000000e+00> : vector<16x128xf32>
    %10 = tpu.matmul %0, %9, %cst_9 {dimension_numbers = #tpu.dot_dimension_numbers<[1], [0], [0], [1], [0, 0, 1, 1], [], []>} : vector<16x160xbf16>, vector<160x128xbf16>, vector<16x128xf32> -> vector<16x128xf32>
    %11 = arith.maximumf %7, %10 : vector<16x128xf32>
    %c3 = arith.constant 3 : index
    %c0_10 = arith.constant 0 : index
    %c0_11 = arith.constant 0 : index
    %12 = vector.load %arg3[%c3, %c0_10, %c0_11] : memref<4x160x128xbf16, #tpu.memory_space<vmem>>, vector<1x160x128xbf16>
    %13 = vector.shape_cast %12 : vector<1x160x128xbf16> to vector<160x128xbf16>
    %cst_12 = arith.constant dense<0.000000e+00> : vector<16x128xf32>
    %14 = tpu.matmul %0, %13, %cst_12 {dimension_numbers = #tpu.dot_dimension_numbers<[1], [0], [0], [1], [0, 0, 1, 1], [], []>} : vector<16x160xbf16>, vector<160x128xbf16>, vector<16x128xf32> -> vector<16x128xf32>
    %15 = arith.maximumf %11, %14 : vector<16x128xf32>
    %c0_13 = arith.constant 0 : index
    %c0_14 = arith.constant 0 : index
    %16 = vector.load %arg2[%c0_13, %c0_14] : memref<16x1xf32, #tpu.memory_space<vmem>>, vector<16x1xf32>
    %17 = vector.broadcast %16 : vector<16x1xf32> to vector<16x128xf32>
    %18 = arith.addf %15, %17 : vector<16x128xf32>
    %cst_15 = arith.constant 0.000000e+00 : f32
    %19 = vector.broadcast %cst_15 : f32 to vector<16x128xf32>
    %20 = arith.maximumf %18, %19 : vector<16x128xf32>
    %21 = arith.truncf %20 : vector<16x128xf32> to vector<16x128xbf16>
    %c0_16 = arith.constant 0 : index
    %c0_17 = arith.constant 0 : index
    %22 = vector.load %arg4[%c0_16, %c0_17] : memref<16x128xbf16, #tpu.memory_space<vmem>>, vector<16x128xbf16>
    tpu.vector_store %arg4[%c0_16, %c0_17], %21 {strides = array<i32>} : memref<16x128xbf16, #tpu.memory_space<vmem>>, vector<16x128xbf16>,
    return
  }
  func.func @transform_0(%arg0: i32) -> (i32, i32) {
    %c0_i32 = arith.constant 0 : i32
    %c0_i32_0 = arith.constant 0 : i32
    %c0_i32_1 = arith.constant 0 : i32
    return %c0_i32, %c0_i32_0 : i32, i32
  }
  func.func @transform_1(%arg0: i32) -> (i32, i32) {
    %c0_i32 = arith.constant 0 : i32
    %c0_i32_0 = arith.constant 0 : i32
    %c0_i32_1 = arith.constant 0 : i32
    return %c0_i32, %c0_i32_0 : i32, i32
  }
  func.func @transform_2(%arg0: i32) -> (i32, i32, i32) {
    %c0_i32 = arith.constant 0 : i32
    %c0_i32_0 = arith.constant 0 : i32
    %c0_i32_1 = arith.constant 0 : i32
    return %c0_i32, %c0_i32_0, %arg0 : i32, i32, i32
  }
  func.func @transform_3(%arg0: i32) -> (i32, i32) {
    %c0_i32 = arith.constant 0 : i32
    %c0_i32_0 = arith.constant 0 : i32
    return %c0_i32, %arg0 : i32, i32
  }
}

module attributes {stable_mosaic.version = 11 : i64} {
  func.func @fc_stack_kernel(%arg0: i32, %arg1: memref<128x400xbf16, #tpu.memory_space<vmem>>, %arg2: memref<400x128xbf16, #tpu.memory_space<vmem>>, %arg3: memref<1x128xf32, #tpu.memory_space<vmem>>, %arg4: memref<128x128xbf16, #tpu.memory_space<vmem>>, %arg5: memref<1x128xf32, #tpu.memory_space<vmem>>, %arg6: memref<128x128xbf16, #tpu.memory_space<vmem>>, %arg7: memref<1x128xf32, #tpu.memory_space<vmem>>, %arg8: memref<128x128xf32, #tpu.memory_space<vmem>>) attributes {dimension_semantics = [#tpu.dimension_semantics<parallel>], iteration_bounds = array<i64: 1>, scalar_prefetch = 0 : i64, scratch_operands = 0 : i64, tpu.core_type = #tpu.core_type<tc>, window_params = [{transform_indices = @transform_0, window_bounds = array<i64: 128, 400>}, {pipeline_mode = #tpu.pipeline_mode<synchronous>, transform_indices = @transform_1, window_bounds = array<i64: 400, 128>}, {pipeline_mode = #tpu.pipeline_mode<synchronous>, transform_indices = @transform_2, window_bounds = array<i64: 1, 128>}, {pipeline_mode = #tpu.pipeline_mode<synchronous>, transform_indices = @transform_3, window_bounds = array<i64: 128, 128>}, {pipeline_mode = #tpu.pipeline_mode<synchronous>, transform_indices = @transform_4, window_bounds = array<i64: 1, 128>}, {pipeline_mode = #tpu.pipeline_mode<synchronous>, transform_indices = @transform_5, window_bounds = array<i64: 128, 128>}, {pipeline_mode = #tpu.pipeline_mode<synchronous>, transform_indices = @transform_6, window_bounds = array<i64: 1, 128>}, {transform_indices = @transform_7, window_bounds = array<i64: 128, 128>}]} {
    %c0 = arith.constant 0 : index
    %c0_0 = arith.constant 0 : index
    %0 = vector.load %arg1[%c0, %c0_0] : memref<128x400xbf16, #tpu.memory_space<vmem>>, vector<128x400xbf16>
    %c0_1 = arith.constant 0 : index
    %c0_2 = arith.constant 0 : index
    %1 = vector.load %arg2[%c0_1, %c0_2] : memref<400x128xbf16, #tpu.memory_space<vmem>>, vector<400x128xbf16>
    %cst = arith.constant dense<0.000000e+00> : vector<128x128xf32>
    %2 = tpu.matmul %0, %1, %cst {dimension_numbers = #tpu.dot_dimension_numbers<[1], [0], [0], [1], [0, 0, 1, 1], [], []>} : vector<128x400xbf16>, vector<400x128xbf16>, vector<128x128xf32> -> vector<128x128xf32>
    %c0_3 = arith.constant 0 : index
    %c0_4 = arith.constant 0 : index
    %3 = vector.load %arg3[%c0_3, %c0_4] : memref<1x128xf32, #tpu.memory_space<vmem>>, vector<1x128xf32>
    %4 = vector.broadcast %3 : vector<1x128xf32> to vector<128x128xf32>
    %5 = arith.addf %2, %4 : vector<128x128xf32>
    %cst_5 = arith.constant 0.000000e+00 : f32
    %6 = vector.broadcast %cst_5 : f32 to vector<128x128xf32>
    %7 = arith.maximumf %5, %6 : vector<128x128xf32>
    %8 = arith.truncf %7 : vector<128x128xf32> to vector<128x128xbf16>
    %c0_6 = arith.constant 0 : index
    %c0_7 = arith.constant 0 : index
    %9 = vector.load %arg4[%c0_6, %c0_7] : memref<128x128xbf16, #tpu.memory_space<vmem>>, vector<128x128xbf16>
    %cst_8 = arith.constant dense<0.000000e+00> : vector<128x128xf32>
    %10 = tpu.matmul %8, %9, %cst_8 {dimension_numbers = #tpu.dot_dimension_numbers<[1], [0], [0], [1], [0, 0, 1, 1], [], []>} : vector<128x128xbf16>, vector<128x128xbf16>, vector<128x128xf32> -> vector<128x128xf32>
    %c0_9 = arith.constant 0 : index
    %c0_10 = arith.constant 0 : index
    %11 = vector.load %arg5[%c0_9, %c0_10] : memref<1x128xf32, #tpu.memory_space<vmem>>, vector<1x128xf32>
    %12 = vector.broadcast %11 : vector<1x128xf32> to vector<128x128xf32>
    %13 = arith.addf %10, %12 : vector<128x128xf32>
    %cst_11 = arith.constant 0.000000e+00 : f32
    %14 = vector.broadcast %cst_11 : f32 to vector<128x128xf32>
    %15 = arith.maximumf %13, %14 : vector<128x128xf32>
    %16 = arith.truncf %15 : vector<128x128xf32> to vector<128x128xbf16>
    %c0_12 = arith.constant 0 : index
    %c0_13 = arith.constant 0 : index
    %17 = vector.load %arg6[%c0_12, %c0_13] : memref<128x128xbf16, #tpu.memory_space<vmem>>, vector<128x128xbf16>
    %cst_14 = arith.constant dense<0.000000e+00> : vector<128x128xf32>
    %18 = tpu.matmul %16, %17, %cst_14 {dimension_numbers = #tpu.dot_dimension_numbers<[1], [0], [0], [1], [0, 0, 1, 1], [], []>} : vector<128x128xbf16>, vector<128x128xbf16>, vector<128x128xf32> -> vector<128x128xf32>
    %c0_15 = arith.constant 0 : index
    %c0_16 = arith.constant 0 : index
    %19 = vector.load %arg7[%c0_15, %c0_16] : memref<1x128xf32, #tpu.memory_space<vmem>>, vector<1x128xf32>
    %20 = vector.broadcast %19 : vector<1x128xf32> to vector<128x128xf32>
    %21 = arith.addf %18, %20 : vector<128x128xf32>
    %c0_17 = arith.constant 0 : index
    %c0_18 = arith.constant 0 : index
    %22 = vector.load %arg8[%c0_17, %c0_18] : memref<128x128xf32, #tpu.memory_space<vmem>>, vector<128x128xf32>
    tpu.vector_store %arg8[%c0_17, %c0_18], %21 {strides = array<i32>} : memref<128x128xf32, #tpu.memory_space<vmem>>, vector<128x128xf32>,
    return
  }
  func.func @transform_0(%arg0: i32) -> (i32, i32) {
    %c0_i32 = arith.constant 0 : i32
    %c0_i32_0 = arith.constant 0 : i32
    return %arg0, %c0_i32 : i32, i32
  }
  func.func @transform_1(%arg0: i32) -> (i32, i32) {
    %c0_i32 = arith.constant 0 : i32
    %c0_i32_0 = arith.constant 0 : i32
    %c0_i32_1 = arith.constant 0 : i32
    return %c0_i32, %c0_i32_0 : i32, i32
  }
  func.func @transform_2(%arg0: i32) -> (i32, i32) {
    %c0_i32 = arith.constant 0 : i32
    %c0_i32_0 = arith.constant 0 : i32
    %c0_i32_1 = arith.constant 0 : i32
    return %c0_i32, %c0_i32_0 : i32, i32
  }
  func.func @transform_3(%arg0: i32) -> (i32, i32) {
    %c0_i32 = arith.constant 0 : i32
    %c0_i32_0 = arith.constant 0 : i32
    %c0_i32_1 = arith.constant 0 : i32
    return %c0_i32, %c0_i32_0 : i32, i32
  }
  func.func @transform_4(%arg0: i32) -> (i32, i32) {
    %c0_i32 = arith.constant 0 : i32
    %c0_i32_0 = arith.constant 0 : i32
    %c0_i32_1 = arith.constant 0 : i32
    return %c0_i32, %c0_i32_0 : i32, i32
  }
  func.func @transform_5(%arg0: i32) -> (i32, i32) {
    %c0_i32 = arith.constant 0 : i32
    %c0_i32_0 = arith.constant 0 : i32
    %c0_i32_1 = arith.constant 0 : i32
    return %c0_i32, %c0_i32_0 : i32, i32
  }
  func.func @transform_6(%arg0: i32) -> (i32, i32) {
    %c0_i32 = arith.constant 0 : i32
    %c0_i32_0 = arith.constant 0 : i32
    %c0_i32_1 = arith.constant 0 : i32
    return %c0_i32, %c0_i32_0 : i32, i32
  }
  func.func @transform_7(%arg0: i32) -> (i32, i32) {
    %c0_i32 = arith.constant 0 : i32
    %c0_i32_0 = arith.constant 0 : i32
    return %arg0, %c0_i32 : i32, i32
  }
}

</mosaic_0001>

<bundles_post_ra>
// kernel: net_forward.3
= control target key start
LH: loop header
LB: loop body
LE: loop exit
PB: predicated region body
PF: predicated region fallthrough
CT: control target
= control target key end

     0   :  { %v773_v1 = vmov 0   ;;  %vm70_vm0 = vcmask 261120   ;;  %s938_s2 = inlined_call_operand.vmem [shape: bf16[4,32,512], index: 2, kind: input, shape index: {}]   ;;  %s939_s0 = inlined_call_operand.vmem [shape: bf16[16,32], index: 0, kind: input, shape index: {}]   ;;  %s940_s1 = inlined_call_operand.vmem [shape: f32[16,1], index: 1, kind: input, shape index: {}]   ;;  %s941_s3 = inlined_call_operand.vmem [shape: bf16[16,512], index: 3, kind: output, shape index: {}]  }
   0x1   :  { %v724_v0 = vld [vmem:[%s938_s2 + $0x24] ss:$16 sps:$4 sm:$0xff]   ;;  %106 = vmatprep.mubr.bf16.mxu0 %v773_v1  ;;  %149 = vmatprep.mubr.bf16.mxu1 %v773_v1  ;;  %v726_v2 = vld [vmem:[%s938_s2 + $0x2c] ss:$16 sps:$4 sm:$0xff]   ;;  %v728_v3 = vld [vmem:[%s938_s2 + $0x20] ss:$16 sps:$4 sm:$0xff]  }
   0x2   :  { %723 = vset.pattern.permute.xlu0 %v773_v1  ;;  %86 = vmatprep.subr.bf16.mxu0 %v724_v0  ;;  %v729_v4 = vld [vmem:[%s938_s2 + $0x28] ss:$16 sps:$4 sm:$0xff]   ;;  %v730_v5 = vld [vmem:[%s938_s2 + $0x4] ss:$16 sps:$4 sm:$0xff]   ;;  %v732_v6 = vld [vmem:[%s938_s2 + $0xc] ss:$16 sps:$4 sm:$0xff]  }
   0x3   :  { %129 = vmatprep.subr.bf16.mxu1 %v726_v2  ;;  %87 = vmatpush1.bf16.msra.mxu0 %v728_v3  ;;  %v734_v7 = vld [vmem:[%s938_s2] ss:$16 sps:$4 sm:$0xff]   ;;  %v735_v8 = vld [vmem:[%s938_s2 + $0x8] ss:$16 sps:$4 sm:$0xff]   ;;  %v739_v11 = vld [vmem:[%s938_s2 + $0x64] ss:$16 sps:$4 sm:$0xff]  }
   0x4   :  { %130 = vmatpush1.bf16.msra.mxu1 %v729_v4  ;;  %88 = vmatprep.subr.bf16.mxu0 %v730_v5  ;;  %v824_v9 = vld [vmem:[%s939_s0] sm:$0xff]   ;;  %v740_v12 = vld [vmem:[%s938_s2 + $0x68] ss:$16 sps:$4 sm:$0xff]   ;;  %v742_v13 = vld [vmem:[%s938_s2 + $0x6c] ss:$16 sps:$4 sm:$0xff]  }
   0x5   :  { %131 = vmatprep.subr.bf16.mxu1 %v732_v6  ;;  %v737_v10 = vld [vmem:[%s938_s2 + $0x60] ss:$16 sps:$4 sm:$0xff]   ;;  %v745_v14 = vld [vmem:[%s938_s2 + $0x44] ss:$16 sps:$4 sm:$0xff]   ;;  %v748_v15 = vld [vmem:[%s938_s2 + $0x4c] ss:$16 sps:$4 sm:$0xff]  }
   0x6   :  { %v743_v16 = vld [vmem:[%s938_s2 + $0x40] ss:$16 sps:$4 sm:$0xff]   ;;  %v746_v17 = vld [vmem:[%s938_s2 + $0x48] ss:$16 sps:$4 sm:$0xff]   ;;  %v751_v18 = vld [vmem:[%s938_s2 + $0xa4] ss:$16 sps:$4 sm:$0xff]  }
   0x7   :  { %89 = vmatpush1.bf16.msra.mxu0 %v734_v7  ;;  %v754_v19 = vld [vmem:[%s938_s2 + $0xac] ss:$16 sps:$4 sm:$0xff]   ;;  %v749_v20 = vld [vmem:[%s938_s2 + $0xa0] ss:$16 sps:$4 sm:$0xff]   ;;  %v752_v21 = vld [vmem:[%s938_s2 + $0xa8] ss:$16 sps:$4 sm:$0xff]  }
   0x8   :  { %132 = vmatpush1.bf16.msra.mxu1 %v735_v8  ;;  %221 = vmatprep.subr.bf16.mxu0 %v739_v11  ;;  %v757_v22 = vld [vmem:[%s938_s2 + $0x84] ss:$16 sps:$4 sm:$0xff]   ;;  %v760_v23 = vld [vmem:[%s938_s2 + $0x8c] ss:$16 sps:$4 sm:$0xff]   ;;  %v755_v24 = vld [vmem:[%s938_s2 + $0x80] ss:$16 sps:$4 sm:$0xff]  }
   0x9   :  { %264 = vmatprep.subr.bf16.mxu1 %v742_v13  ;;  %v758_v25 = vld [vmem:[%s938_s2 + $0x88] ss:$16 sps:$4 sm:$0xff]   ;;  %v763_v26 = vld [vmem:[%s938_s2 + $0xe4] ss:$16 sps:$4 sm:$0xff]   ;;  %v766_v27 = vld [vmem:[%s938_s2 + $0xec] ss:$16 sps:$4 sm:$0xff]  }
   0xa   :  { %658 = vmatmul.mubr.msk.bf16.vlgmr.msra.gmra.mxu0 %vm70_vm0, %v824_v9  ;;  %v589_v28 = vld [vmem:[%s940_s1] sm:$0xff]  ;;  %v764_v30 = vld [vmem:[%s938_s2 + $0xe8] ss:$16 sps:$4 sm:$0xff]   ;;  %v772_v32 = vld [vmem:[%s938_s2 + $0xcc] ss:$16 sps:$4 sm:$0xff]  }
   0xb   :  { %659 = vmatmul.mubr.msk.bf16.vlgmr.msra.gmra.mxu1 %vm70_vm0, %v824_v9  ;;  %222 = vmatpush1.bf16.msra.mxu0 %v737_v10  ;;  %v761_v29 = vld [vmem:[%s938_s2 + $0xe0] ss:$16 sps:$4 sm:$0xff]   ;;  %v769_v31 = vld [vmem:[%s938_s2 + $0xc4] ss:$16 sps:$4 sm:$0xff]   ;;  %v770_v34 = vld [vmem:[%s938_s2 + $0xc8] ss:$16 sps:$4 sm:$0xff]  }
   0xc   :  { %265 = vmatpush1.bf16.msra.mxu1 %v740_v12  ;;  %223 = vmatprep.subr.bf16.mxu0 %v745_v14  ;;  %v767_v33 = vld [vmem:[%s938_s2 + $0xc0] ss:$16 sps:$4 sm:$0xff]   ;;  %v590_v35 = vld [vmem:[%s940_s1 + $0x8] sm:$0xff] }
   0xd   :  { %266 = vmatprep.subr.bf16.mxu1 %v748_v15  ;;  %241 = vmatprep.mubr.bf16.mxu0 %v773_v1 }
   0xe   :  { %284 = vmatprep.mubr.bf16.mxu1 %v773_v1  ;;  %593 = vperm.xlu0 %723, %v589_v28  }
   0xf   :  { %224 = vmatpush1.bf16.msra.mxu0 %v743_v16 }
  0x10   :  { %267 = vmatpush1.bf16.msra.mxu1 %v746_v17  ;;  %364 = vmatprep.subr.bf16.mxu0 %v751_v18 }
  0x11   :  { %407 = vmatprep.subr.bf16.mxu1 %v754_v19 }
  0x12   :  { %676 = vmatmul.mubr.msk.bf16.vlgmr.msra.gmra.mxu0 %vm70_vm0, %v824_v9  ;;  %598 = vperm.xlu0 %723, %v590_v35  }
  0x13   :  { %677 = vmatmul.mubr.msk.bf16.vlgmr.msra.gmra.mxu1 %vm70_vm0, %v824_v9  ;;  %365 = vmatpush1.bf16.msra.mxu0 %v749_v20 }
  0x14   :  { %408 = vmatpush1.bf16.msra.mxu1 %v752_v21  ;;  %366 = vmatprep.subr.bf16.mxu0 %v757_v22 }
  0x15   :  { %409 = vmatprep.subr.bf16.mxu1 %v760_v23  ;;  %384 = vmatprep.mubr.bf16.mxu0 %v773_v1 }
  0x16   :  { %427 = vmatprep.mubr.bf16.mxu1 %v773_v1 }
  0x17   :  { %367 = vmatpush1.bf16.msra.mxu0 %v755_v24 }
  0x18   :  { %410 = vmatpush1.bf16.msra.mxu1 %v758_v25  ;;  %507 = vmatprep.subr.bf16.mxu0 %v763_v26 }
  0x19   :  { %550 = vmatprep.subr.bf16.mxu1 %v766_v27 }
  0x1a   :  { %694 = vmatmul.mubr.msk.bf16.vlgmr.msra.gmra.mxu0 %vm70_vm0, %v824_v9 }
  0x1b   :  { %695 = vmatmul.mubr.msk.bf16.vlgmr.msra.gmra.mxu1 %vm70_vm0, %v824_v9  ;;  %508 = vmatpush1.bf16.msra.mxu0 %v761_v29 }
  0x1c   :  { %551 = vmatpush1.bf16.msra.mxu1 %v764_v30  ;;  %509 = vmatprep.subr.bf16.mxu0 %v769_v31 }
  0x1d   :  { %552 = vmatprep.subr.bf16.mxu1 %v772_v32  ;;  %527 = vmatprep.mubr.bf16.mxu0 %v773_v1 }
  0x1e   :  { %570 = vmatprep.mubr.bf16.mxu1 %v773_v1 }
  0x1f   :  { %510 = vmatpush1.bf16.msra.mxu0 %v767_v33 }
  0x20   :  { %553 = vmatpush1.bf16.msra.mxu1 %v770_v34 }
  0x22   :  { %712 = vmatmul.mubr.msk.bf16.vlgmr.msra.gmra.mxu0 %vm70_vm0, %v824_v9 }
  0x23   :  { %713 = vmatmul.mubr.msk.bf16.vlgmr.msra.gmra.mxu1 %vm70_vm0, %v824_v9 }
  0x89   :  { %v594_v8 = vpop.permute.xlu0 %593 }
  0x8d   :  { %v599_v35 = vpop.permute.xlu0 %598 }
  0xca   :  { %v108_v36 = vpop.f32.mrf.mxu0 }
  0xcb   :  { %v151_v37 = vpop.f32.mrf.mxu1 }
  0xcc   :  { %v110_v38 = vpop.f32.mrf.mxu0 }
  0xcd   :  { %v153_v39 = vpop.f32.mrf.mxu1 }
  0xce   :  { %v112_v40 = vpop.f32.mrf.mxu0 }
  0xcf   :  { %v155_v41 = vpop.f32.mrf.mxu1 }
  0xd0   :  { %v114_v42 = vpop.f32.mrf.mxu0 }
  0xd1   :  { %v157_v43 = vpop.f32.mrf.mxu1 }
  0xd2   :  { %v243_v44 = vpop.f32.mrf.mxu0 }
  0xd3   :  { %v286_v45 = vpop.f32.mrf.mxu1  ;;  %v295_v58 = vmax.f32 %v108_v36, %v243_v44 }
  0xd4   :  { %v245_v46 = vpop.f32.mrf.mxu0  ;;  %v297_v59 = vmax.f32 %v151_v37, %v286_v45 }
  0xd5   :  { %v288_v47 = vpop.f32.mrf.mxu1  ;;  %v296_v62 = vmax.f32 %v110_v38, %v245_v46 }
  0xd6   :  { %v247_v48 = vpop.f32.mrf.mxu0  ;;  %v298_v63 = vmax.f32 %v153_v39, %v288_v47 }
  0xd7   :  { %v290_v49 = vpop.f32.mrf.mxu1  ;;  %v299_v9 = vmax.f32 %v112_v40, %v247_v48 }
  0xd8   :  { %v249_v50 = vpop.f32.mrf.mxu0  ;;  %v301_v10 = vmax.f32 %v155_v41, %v290_v49 }
  0xd9   :  { %v292_v51 = vpop.f32.mrf.mxu1  ;;  %v300_v11 = vmax.f32 %v114_v42, %v249_v50 }
  0xda   :  { %v386_v52 = vpop.f32.mrf.mxu0  ;;  %v302_v12 = vmax.f32 %v157_v43, %v292_v51 }
  0xdb   :  { %v429_v53 = vpop.f32.mrf.mxu1  ;;  %v438_v0 = vmax.f32 %v295_v58, %v386_v52 }
  0xdc   :  { %v388_v54 = vpop.f32.mrf.mxu0  ;;  %v440_v1 = vmax.f32 %v297_v59, %v429_v53 }
  0xdd   :  { %v431_v55 = vpop.f32.mrf.mxu1  ;;  %v439_v4 = vmax.f32 %v296_v62, %v388_v54 }
  0xde   :  { %v390_v56 = vpop.f32.mrf.mxu0  ;;  %v441_v5 = vmax.f32 %v298_v63, %v431_v55 }
  0xdf   :  { %v433_v57 = vpop.f32.mrf.mxu1  ;;  %v442_v19 = vmax.f32 %v299_v9, %v390_v56 }
  0xe0   :  { %v392_v60 = vpop.f32.mrf.mxu0  ;;  %v444_v20 = vmax.f32 %v301_v10, %v433_v57 }
  0xe1   :  { %v435_v61 = vpop.f32.mrf.mxu1  ;;  %v443_v23 = vmax.f32 %v300_v11, %v392_v60 }
  0xe2   :  { %v529_v2 = vpop.f32.mrf.mxu0  ;;  %v445_v24 = vmax.f32 %v302_v12, %v435_v61 }
  0xe3   :  { %v572_v3 = vpop.f32.mrf.mxu1  ;;  %v581_v6 = vmax.f32 %v438_v0, %v529_v2 }
  0xe4   :  { %v583_v7 = vmax.f32 %v440_v1, %v572_v3  ;;  %v531_v13 = vpop.f32.mrf.mxu0 }
  0xe5   :  { %v574_v14 = vpop.f32.mrf.mxu1  ;;  %v601_v15 = vadd.f32 %v594_v8, %v581_v6  ;;  %v582_v17 = vmax.f32 %v439_v4, %v531_v13 }
  0xe6   :  { %v603_v16 = vadd.f32 %v594_v8, %v583_v7  ;;  %v584_v18 = vmax.f32 %v441_v5, %v574_v14  ;;  %v533_v21 = vpop.f32.mrf.mxu0 }
  0xe7   :  { %v576_v22 = vpop.f32.mrf.mxu1  ;;  %v602_v25 = vadd.f32 %v594_v8, %v582_v17  ;;  %v609_v27 = vmax.f32 %v601_v15, 0.0  ;;  %v585_v29 = vmax.f32 %v442_v19, %v533_v21 }
  0xe8   :  { %v604_v26 = vadd.f32 %v594_v8, %v584_v18  ;;  %v611_v28 = vmax.f32 %v603_v16, 0.0  ;;  %v587_v30 = vmax.f32 %v444_v20, %v576_v22  ;;  %v535_v31 = vpop.f32.mrf.mxu0 }
  0xe9   :  { %v578_v32 = vpop.f32.mrf.mxu1  ;;  %v610_v33 = vmax.f32 %v602_v25, 0.0  ;;  %v586_v36 = vmax.f32 %v443_v23, %v535_v31  ;;  %v605_v38 = vadd.f32 %v599_v35, %v585_v29 }
  0xea   :  { %v612_v34 = vmax.f32 %v604_v26, 0.0  ;;  %v588_v37 = vmax.f32 %v445_v24, %v578_v32  ;;  %v607_v39 = vadd.f32 %v599_v35, %v587_v30 }
  0xeb   :  { %v718_v40 = vpack.c.bf16 %v610_v33, %v609_v27  ;;  %v606_v42 = vadd.f32 %v599_v35, %v586_v36  ;;  %v613_v44 = vmax.f32 %v605_v38, 0.0 }
  0xec   :  { %v719_v41 = vpack.c.bf16 %v612_v34, %v611_v28  ;;  %v608_v43 = vadd.f32 %v599_v35, %v588_v37  ;;  %v615_v45 = vmax.f32 %v607_v39, 0.0 }
  0xed   :  { %641 = vst [vmem:[%s941_s3] sm:$0xff] %v718_v40  ;;  %v614_v46 = vmax.f32 %v606_v42, 0.0 }
  0xee   :  { %642 = vst [vmem:[%s941_s3 + $0x8] sm:$0xff] %v719_v41  ;;  %v616_v47 = vmax.f32 %v608_v43, 0.0 }
  0xef   :  { %v720_v48 = vpack.c.bf16 %v614_v46, %v613_v44 }
  0xf0   :  { %v721_v49 = vpack.c.bf16 %v616_v47, %v615_v45 }
  0xf1   :  { %643 = vst [vmem:[%s941_s3 + $0x10] sm:$0xff] %v720_v48 }
  0xf2   :  { %644 = vst [vmem:[%s941_s3 + $0x18] sm:$0xff] %v721_v49 }

// kernel: net_forward.4
= control target key start
LH: loop header
LB: loop body
LE: loop exit
PB: predicated region body
PF: predicated region fallthrough
CT: control target
= control target key end

     0   :  { %v713_v0 = vmov 0   ;;  %vm106_vm0 = vcmask 261120   ;;  %s920_s2 = inlined_call_operand.vmem [shape: bf16[4,160,128], index: 2, kind: input, shape index: {}]   ;;  %s921_s0 = inlined_call_operand.vmem [shape: bf16[16,160], index: 0, kind: input, shape index: {}]   ;;  %s922_s1 = inlined_call_operand.vmem [shape: f32[16,1], index: 1, kind: input, shape index: {}]   ;;  %s923_s3 = inlined_call_operand.vmem [shape: bf16[16,128], index: 3, kind: output, shape index: {}]  }
   0x1   :  { %110 = vmatprep.subr.bf16.mxu0 %v713_v0  ;;  %232 = vmatprep.subr.bf16.mxu1 %v713_v0  ;;  %v670_v1 = vld [vmem:[%s920_s2 + $0x38] sm:$0xff]   ;;  %v671_v2 = vld [vmem:[%s920_s2 + $0x88] sm:$0xff]   ;;  %v672_v3 = vld [vmem:[%s920_s2 + $0x30] sm:$0xff]  }
   0x2   :  { %669 = vset.pattern.permute.xlu0 %v713_v0  ;;  %111 = vmatpush1.bf16.msra.mxu0 %v670_v1  ;;  %v673_v4 = vld [vmem:[%s920_s2 + $0x80] sm:$0xff]   ;;  %v674_v5 = vld [vmem:[%s920_s2 + $0x28] sm:$0xff]   ;;  %v675_v6 = vld [vmem:[%s920_s2 + $0x78] sm:$0xff]  }
   0x3   :  { %233 = vmatpush1.bf16.msra.mxu1 %v671_v2  ;;  %112 = vmatprep.subr.bf16.mxu0 %v713_v0  ;;  %v676_v7 = vld [vmem:[%s920_s2 + $0x20] sm:$0xff]   ;;  %v677_v8 = vld [vmem:[%s920_s2 + $0x70] sm:$0xff]   ;;  %v678_v9 = vld [vmem:[%s920_s2 + $0x18] sm:$0xff]  }
   0x4   :  { %234 = vmatprep.subr.bf16.mxu1 %v713_v0  ;;  %v679_v10 = vld [vmem:[%s920_s2 + $0x68] sm:$0xff]   ;;  %v680_v11 = vld [vmem:[%s920_s2 + $0x10] sm:$0xff]   ;;  %v681_v12 = vld [vmem:[%s920_s2 + $0x60] sm:$0xff]  }
   0x5   :  { %v690_v13 = vld [vmem:[%s921_s0 + $0x4] ss:$8 sps:$4 sm:$0xff]   ;;  %v683_v15 = vld [vmem:[%s920_s2 + $0x58] sm:$0xff]   ;;  %v685_v17 = vld [vmem:[%s920_s2 + $0x50] sm:$0xff]  }
   0x6   :  { %113 = vmatpush1.bf16.msra.mxu0 %v672_v3  ;;  %v682_v14 = vld [vmem:[%s920_s2 + $0x8] sm:$0xff]   ;;  %565 = vmatprep.mubr.msk.bf16.mxu0 %vm106_vm0, %v690_v13  ;;  %v684_v16 = vld [vmem:[%s920_s2] sm:$0xff]   ;;  %v687_v19 = vld [vmem:[%s920_s2 + $0x98] sm:$0xff]  }
   0x7   :  { %235 = vmatpush1.bf16.msra.mxu1 %v673_v4  ;;  %114 = vmatprep.subr.bf16.mxu0 %v713_v0  ;;  %v686_v18 = vld [vmem:[%s920_s2 + $0x48] sm:$0xff]   ;;  %v688_v20 = vld [vmem:[%s920_s2 + $0x40] sm:$0xff]   ;;  %v689_v21 = vld [vmem:[%s920_s2 + $0x90] sm:$0xff]  }
   0x8   :  { %236 = vmatprep.subr.bf16.mxu1 %v713_v0  ;;  %596 = vmatprep.mubr.msk.bf16.mxu1 %vm106_vm0, %v690_v13  ;;  %v823_v22 = vld [vmem:[%s921_s0] ss:$8 sps:$4 sm:$0xff]   ;;  %v693_v23 = vld [vmem:[%s920_s2 + $0xd8] sm:$0xff]   ;;  %v695_v25 = vld [vmem:[%s920_s2 + $0xd0] sm:$0xff]  }
   0x9   :  { %v694_v24 = vld [vmem:[%s920_s2 + $0x128] sm:$0xff]   ;;  %v523_v26 = vld [vmem:[%s922_s1] sm:$0xff]  ;;  %v698_v30 = vld [vmem:[%s920_s2 + $0x118] sm:$0xff]  }
   0xa   :  { %115 = vmatpush1.bf16.msra.mxu0 %v674_v5  ;;  %v696_v27 = vld [vmem:[%s920_s2 + $0x120] sm:$0xff]   ;;  %527 = vperm.xlu0 %669, %v523_v26   ;;  %v697_v28 = vld [vmem:[%s920_s2 + $0xc8] sm:$0xff]   ;;  %v700_v32 = vld [vmem:[%s920_s2 + $0x110] sm:$0xff]  }
   0xb   :  { %237 = vmatpush1.bf16.msra.mxu1 %v675_v6  ;;  %116 = vmatprep.subr.bf16.mxu0 %v713_v0  ;;  %v524_v29 = vld [vmem:[%s922_s1 + $0x8] sm:$0xff]  ;;  %v699_v31 = vld [vmem:[%s920_s2 + $0xc0] sm:$0xff]   ;;  %v701_v33 = vld [vmem:[%s920_s2 + $0xb8] sm:$0xff]  }
   0xc   :  { %238 = vmatprep.subr.bf16.mxu1 %v713_v0  ;;  %v702_v34 = vld [vmem:[%s920_s2 + $0x108] sm:$0xff]   ;;  %v703_v35 = vld [vmem:[%s920_s2 + $0xb0] sm:$0xff]   ;;  %v704_v36 = vld [vmem:[%s920_s2 + $0x100] sm:$0xff]  }
   0xd   :  { %v705_v37 = vld [vmem:[%s920_s2 + $0xa8] sm:$0xff]   ;;  %v706_v38 = vld [vmem:[%s920_s2 + $0xf8] sm:$0xff]   ;;  %v707_v39 = vld [vmem:[%s920_s2 + $0xa0] sm:$0xff]  }
   0xe   :  { %117 = vmatpush1.bf16.msra.mxu0 %v676_v7  ;;  %532 = vperm.xlu0 %669, %v524_v29   ;;  %v708_v40 = vld [vmem:[%s920_s2 + $0xf0] sm:$0xff]   ;;  %v709_v41 = vld [vmem:[%s920_s2 + $0xe8] sm:$0xff]   ;;  %v710_v42 = vld [vmem:[%s920_s2 + $0x138] sm:$0xff]  }
   0xf   :  { %239 = vmatpush1.bf16.msra.mxu1 %v677_v8  ;;  %118 = vmatprep.subr.bf16.mxu0 %v713_v0  ;;  %v711_v43 = vld [vmem:[%s920_s2 + $0xe0] sm:$0xff]   ;;  %v712_v44 = vld [vmem:[%s920_s2 + $0x130] sm:$0xff]  }
  0x10   :  { %240 = vmatprep.subr.bf16.mxu1 %v713_v0 }
  0x12   :  { %119 = vmatpush1.bf16.msra.mxu0 %v678_v9 }
  0x13   :  { %241 = vmatpush1.bf16.msra.mxu1 %v679_v10  ;;  %120 = vmatprep.subr.bf16.mxu0 %v713_v0 }
  0x14   :  { %242 = vmatprep.subr.bf16.mxu1 %v713_v0 }
  0x16   :  { %121 = vmatpush1.bf16.msra.mxu0 %v680_v11 }
  0x17   :  { %243 = vmatpush1.bf16.msra.mxu1 %v681_v12  ;;  %122 = vmatprep.subr.bf16.mxu0 %v713_v0 }
  0x18   :  { %244 = vmatprep.subr.bf16.mxu1 %v713_v0 }
  0x1a   :  { %123 = vmatpush1.bf16.msra.mxu0 %v682_v14 }
  0x1b   :  { %245 = vmatpush1.bf16.msra.mxu1 %v683_v15  ;;  %124 = vmatprep.subr.bf16.mxu0 %v713_v0 }
  0x1c   :  { %246 = vmatprep.subr.bf16.mxu1 %v713_v0 }
  0x1e   :  { %125 = vmatpush1.bf16.msra.mxu0 %v684_v16 }
  0x1f   :  { %247 = vmatpush1.bf16.msra.mxu1 %v685_v17  ;;  %138 = vmatprep.subr.bf16.mxu0 %v713_v0 }
  0x20   :  { %260 = vmatprep.subr.bf16.mxu1 %v713_v0 }
  0x22   :  { %139 = vmatpush2.bf16.msra.mxu0 %v686_v18 }
  0x23   :  { %261 = vmatpush2.bf16.msra.mxu1 %v687_v19  ;;  %140 = vmatprep.subr.bf16.mxu0 %v713_v0 }
  0x24   :  { %262 = vmatprep.subr.bf16.mxu1 %v713_v0 }
  0x26   :  { %141 = vmatpush2.bf16.msra.mxu0 %v688_v20 }
  0x27   :  { %263 = vmatpush2.bf16.msra.mxu1 %v689_v21  ;;  %356 = vmatprep.subr.bf16.mxu0 %v713_v0 }
  0x28   :  { %480 = vmatprep.subr.bf16.mxu1 %v713_v0 }
  0x29   :  { %143 = vmatmul.mubr.bf16.vlgmr.msra.gmra.mxu0 %v823_v22 }
  0x2a   :  { %265 = vmatmul.mubr.bf16.vlgmr.msra.gmra.mxu1 %v823_v22  ;;  %357 = vmatpush1.bf16.msra.mxu0 %v693_v23 }
  0x2b   :  { %481 = vmatpush1.bf16.msra.mxu1 %v694_v24  ;;  %358 = vmatprep.subr.bf16.mxu0 %v713_v0 }
  0x2c   :  { %482 = vmatprep.subr.bf16.mxu1 %v713_v0  ;;  %627 = vmatprep.mubr.msk.bf16.mxu0 %vm106_vm0, %v690_v13 }
  0x2d   :  { %658 = vmatprep.mubr.msk.bf16.mxu1 %vm106_vm0, %v690_v13 }
  0x2e   :  { %359 = vmatpush1.bf16.msra.mxu0 %v695_v25 }
  0x2f   :  { %483 = vmatpush1.bf16.msra.mxu1 %v696_v27  ;;  %360 = vmatprep.subr.bf16.mxu0 %v713_v0 }
  0x30   :  { %484 = vmatprep.subr.bf16.mxu1 %v713_v0 }
  0x32   :  { %361 = vmatpush1.bf16.msra.mxu0 %v697_v28 }
  0x33   :  { %485 = vmatpush1.bf16.msra.mxu1 %v698_v30  ;;  %362 = vmatprep.subr.bf16.mxu0 %v713_v0 }
  0x34   :  { %486 = vmatprep.subr.bf16.mxu1 %v713_v0 }
  0x36   :  { %363 = vmatpush1.bf16.msra.mxu0 %v699_v31 }
  0x37   :  { %487 = vmatpush1.bf16.msra.mxu1 %v700_v32  ;;  %364 = vmatprep.subr.bf16.mxu0 %v713_v0 }
  0x38   :  { %488 = vmatprep.subr.bf16.mxu1 %v713_v0 }
  0x3a   :  { %365 = vmatpush1.bf16.msra.mxu0 %v701_v33 }
  0x3b   :  { %489 = vmatpush1.bf16.msra.mxu1 %v702_v34  ;;  %366 = vmatprep.subr.bf16.mxu0 %v713_v0 }
  0x3c   :  { %490 = vmatprep.subr.bf16.mxu1 %v713_v0 }
  0x3e   :  { %367 = vmatpush1.bf16.msra.mxu0 %v703_v35 }
  0x3f   :  { %491 = vmatpush1.bf16.msra.mxu1 %v704_v36  ;;  %368 = vmatprep.subr.bf16.mxu0 %v713_v0 }
  0x40   :  { %492 = vmatprep.subr.bf16.mxu1 %v713_v0 }
  0x42   :  { %369 = vmatpush1.bf16.msra.mxu0 %v705_v37 }
  0x43   :  { %493 = vmatpush1.bf16.msra.mxu1 %v706_v38  ;;  %370 = vmatprep.subr.bf16.mxu0 %v713_v0 }
  0x44   :  { %494 = vmatprep.subr.bf16.mxu1 %v713_v0 }
  0x46   :  { %371 = vmatpush1.bf16.msra.mxu0 %v707_v39 }
  0x47   :  { %495 = vmatpush1.bf16.msra.mxu1 %v708_v40  ;;  %384 = vmatprep.subr.bf16.mxu0 %v713_v0 }
  0x48   :  { %508 = vmatprep.subr.bf16.mxu1 %v713_v0 }
  0x4a   :  { %385 = vmatpush2.bf16.msra.mxu0 %v709_v41 }
  0x4b   :  { %509 = vmatpush2.bf16.msra.mxu1 %v710_v42  ;;  %386 = vmatprep.subr.bf16.mxu0 %v713_v0 }
  0x4c   :  { %510 = vmatprep.subr.bf16.mxu1 %v713_v0 }
  0x4e   :  { %387 = vmatpush2.bf16.msra.mxu0 %v711_v43 }
  0x4f   :  { %511 = vmatpush2.bf16.msra.mxu1 %v712_v44 }
  0x51   :  { %389 = vmatmul.mubr.bf16.vlgmr.msra.gmra.mxu0 %v823_v22 }
  0x52   :  { %513 = vmatmul.mubr.bf16.vlgmr.msra.gmra.mxu1 %v823_v22 }
  0x85   :  { %v528_v57 = vpop.permute.xlu0 %527 }
  0x89   :  { %v533_v5 = vpop.permute.xlu0 %532 }
  0xe9   :  { %v144_v45 = vpop.f32.mrf.mxu0 }
  0xea   :  { %v266_v46 = vpop.f32.mrf.mxu1 }
  0xeb   :  { %v146_v47 = vpop.f32.mrf.mxu0  ;;  %v273_v53 = vmax.f32 %v144_v45, %v266_v46 }
  0xec   :  { %v268_v48 = vpop.f32.mrf.mxu1 }
  0xed   :  { %v147_v49 = vpop.f32.mrf.mxu0 }
  0xee   :  { %v269_v50 = vpop.f32.mrf.mxu1 }
  0xef   :  { %v149_v51 = vpop.f32.mrf.mxu0  ;;  %v274_v59 = vmax.f32 %v147_v49, %v269_v50 }
  0xf0   :  { %v271_v52 = vpop.f32.mrf.mxu1 }
 0x111   :  { %v390_v54 = vpop.f32.mrf.mxu0 }
 0x112   :  { %v397_v55 = vmax.f32 %v273_v53, %v390_v54  ;;  %v514_v56 = vpop.f32.mrf.mxu1 }
 0x113   :  { %v392_v58 = vpop.f32.mrf.mxu0 }
 0x114   :  { %v521_v60 = vmax.f32 %v397_v55, %v514_v56  ;;  %v516_v61 = vpop.f32.mrf.mxu1 }
 0x115   :  { %v393_v62 = vpop.f32.mrf.mxu0 }
 0x116   :  { %v398_v63 = vmax.f32 %v274_v59, %v393_v62  ;;  %v517_v0 = vpop.f32.mrf.mxu1  ;;  %v535_v2 = vadd.f32 %v528_v57, %v521_v60 }
 0x117   :  { %v395_v1 = vpop.f32.mrf.mxu0 }
 0x118   :  { %v522_v3 = vmax.f32 %v398_v63, %v517_v0  ;;  %v519_v4 = vpop.f32.mrf.mxu1  ;;  %v537_v7 = vmax.f32 %v535_v2, 0.0 }
 0x11a   :  { %v536_v6 = vadd.f32 %v533_v5, %v522_v3 }
 0x11c   :  { %v538_v8 = vmax.f32 %v536_v6, 0.0 }
 0x11e   :  { %v666_v9 = vpack.c.bf16 %v538_v8, %v537_v7 }
 0x120   :  { %667 = vst [vmem:[%s923_s3] sm:$0xff] %v666_v9  }

// kernel: net_forward.5
= control target key start
LH: loop header
LB: loop body
LE: loop exit
PB: predicated region body
PF: predicated region fallthrough
CT: control target
= control target key end

     0   :  { %v1375_v0 = vmov 0   ;;  %vm418_vm0 = vcmask 130048   ;;  %s1727_s1 = inlined_call_operand.vmem [shape: bf16[400,128], index: 1, kind: input, shape index: {}]   ;;  %s1728_s0 = inlined_call_operand.vmem [shape: bf16[128,400], index: 0, kind: input, shape index: {}]   ;;  %s1729_s3 = inlined_call_operand.vmem [shape: bf16[128,128], index: 3, kind: input, shape index: {}]   ;;  %s1730_s5 = inlined_call_operand.vmem [shape: bf16[128,128], index: 5, kind: input, shape index: {}]   ;;  %s1731_s2 = inlined_call_operand.vmem [shape: f32[1,128], index: 2, kind: input, shape index: {}]   ;;  %s1732_s4 = inlined_call_operand.vmem [shape: f32[1,128], index: 4, kind: input, shape index: {}]   ;;  %s1733_s6 = inlined_call_operand.vmem [shape: f32[1,128], index: 6, kind: input, shape index: {}]   ;;  %s1734_s7 = inlined_call_operand.vmem [shape: f32[128,128], index: 7, kind: output, shape index: {}]  }
   0x1   :  { %540 = vmatprep.subr.bf16.mxu1 %v1375_v0  ;;  %v1286_v1 = vld [vmem:[%s1727_s1 + $0x78] sm:$0xff]   ;;  %v1289_v4 = vld [vmem:[%s1727_s1 + $0x70] sm:$0xff]   ;;  %v1292_v7 = vld [vmem:[%s1727_s1 + $0x68] sm:$0xff]  }
   0x2   :  { %v1287_v2 = vld [vmem:[%s1727_s1 + $0xb8] sm:$0xff]   ;;  %1125 = vmatprep.subr.bf16.mxu0 %v1286_v1  ;;  %v1290_v5 = vld [vmem:[%s1727_s1 + $0xb0] sm:$0xff]   ;;  %v1293_v8 = vld [vmem:[%s1727_s1 + $0xa8] sm:$0xff]  }
   0x3   :  { %v1288_v3 = vld [vmem:[%s1727_s1 + $0x38] sm:$0xff]   ;;  %541 = vmatpush1.bf16.msra.mxu1 %v1287_v2  ;;  %v1291_v6 = vld [vmem:[%s1727_s1 + $0x30] sm:$0xff]   ;;  %v1294_v9 = vld [vmem:[%s1727_s1 + $0x28] sm:$0xff]  }
   0x4   :  { %1126 = vmatpush3.bf16.msra.mxu0 %v1288_v3  ;;  %542 = vmatprep.subr.bf16.mxu1 %v1375_v0  ;;  %v1295_v10 = vld [vmem:[%s1727_s1 + $0x60] sm:$0xff]   ;;  %v1298_v13 = vld [vmem:[%s1727_s1 + $0x58] sm:$0xff]   ;;  %v1301_v16 = vld [vmem:[%s1727_s1 + $0x50] sm:$0xff]  }
   0x5   :  { %1127 = vmatprep.subr.bf16.mxu0 %v1289_v4  ;;  %v1296_v11 = vld [vmem:[%s1727_s1 + $0xa0] sm:$0xff]   ;;  %v1299_v14 = vld [vmem:[%s1727_s1 + $0x98] sm:$0xff]   ;;  %v1302_v17 = vld [vmem:[%s1727_s1 + $0x90] sm:$0xff]  }
   0x6   :  { %v1297_v12 = vld [vmem:[%s1727_s1 + $0x20] sm:$0xff]   ;;  %v1300_v15 = vld [vmem:[%s1727_s1 + $0x18] sm:$0xff]   ;;  %v1303_v18 = vld [vmem:[%s1727_s1 + $0x10] sm:$0xff]  }
   0x7   :  { %543 = vmatpush1.bf16.msra.mxu1 %v1290_v5  ;;  %v1304_v19 = vld [vmem:[%s1727_s1 + $0x48] sm:$0xff]   ;;  %v1307_v22 = vld [vmem:[%s1727_s1 + $0x40] sm:$0xff]   ;;  %v1359_v38 = vld [vmem:[%s1729_s3 + $0x38] sm:$0xff]  }
   0x8   :  { %1128 = vmatpush3.bf16.msra.mxu0 %v1291_v6  ;;  %544 = vmatprep.subr.bf16.mxu1 %v1375_v0  ;;  %v1305_v20 = vld [vmem:[%s1727_s1 + $0x88] sm:$0xff]   ;;  %v1312_v23 = vld [vmem:[%s1728_s0 + $0x4] ss:$16 sps:$4 sm:$0xff]   ;;  %v1310_v27 = vld [vmem:[%s1728_s0] ss:$16 sps:$4 sm:$0xff]  }
   0x9   :  { %1129 = vmatprep.subr.bf16.mxu0 %v1292_v7  ;;  %v1306_v21 = vld [vmem:[%s1727_s1 + $0x8] sm:$0xff]   ;;  %v1308_v24 = vld [vmem:[%s1727_s1 + $0x80] sm:$0xff]   ;;  %475 = vmatprep.mubr.bf16.mxu0 %v1312_v23  ;;  %v1360_v40 = vld [vmem:[%s1729_s3 + $0x30] sm:$0xff]  }
   0xa   :  { %v1316_v25 = vld [vmem:[%s1728_s0 + $0xc] ss:$16 sps:$4 sm:$0xff]   ;;  %v1309_v26 = vld [vmem:[%s1727_s1] sm:$0xff]   ;;  %v1314_v30 = vld [vmem:[%s1728_s0 + $0x8] ss:$16 sps:$4 sm:$0xff]  }
   0xb   :  { %545 = vmatpush1.bf16.msra.mxu1 %v1293_v8  ;;  %1099 = vmatprep.mubr.msk.bf16.mxu1 %vm418_vm0, %v1316_v25  ;;  %v1313_v28 = vld [vmem:[%s1727_s1 + $0xc0] sm:$0xff]   ;;  %v1320_v31 = vld [vmem:[%s1728_s0 + $0x2c] ss:$16 sps:$4 sm:$0xff]   ;;  %v1322_v34 = vld [vmem:[%s1728_s0 + $0x28] ss:$16 sps:$4 sm:$0xff]  }
   0xc   :  { %1130 = vmatpush3.bf16.msra.mxu0 %v1294_v9  ;;  %546 = vmatprep.subr.bf16.mxu1 %v1375_v0  ;;  %v1317_v29 = vld [vmem:[%s1728_s0 + $0x24] ss:$16 sps:$4 sm:$0xff]   ;;  %v1319_v32 = vld [vmem:[%s1728_s0 + $0x20] ss:$16 sps:$4 sm:$0xff]   ;;  %v1326_v35 = vld [vmem:[%s1728_s0 + $0x4c] ss:$16 sps:$4 sm:$0xff]  }
   0xd   :  { %1131 = vmatprep.subr.bf16.mxu0 %v1295_v10  ;;  %v1323_v33 = vld [vmem:[%s1728_s0 + $0x44] ss:$16 sps:$4 sm:$0xff]   ;;  %v1325_v36 = vld [vmem:[%s1728_s0 + $0x40] ss:$16 sps:$4 sm:$0xff]   ;;  %v1328_v39 = vld [vmem:[%s1728_s0 + $0x48] ss:$16 sps:$4 sm:$0xff]  }
   0xe   :  { %v1329_v37 = vld [vmem:[%s1728_s0 + $0x64] ss:$16 sps:$4 sm:$0xff]   ;;  %v1332_v41 = vld [vmem:[%s1728_s0 + $0x6c] ss:$16 sps:$4 sm:$0xff]   ;;  %v1331_v42 = vld [vmem:[%s1728_s0 + $0x60] ss:$16 sps:$4 sm:$0xff]  }
   0xf   :  { %547 = vmatpush1.bf16.msra.mxu1 %v1296_v11  ;;  %v1335_v43 = vld [vmem:[%s1728_s0 + $0x84] ss:$16 sps:$4 sm:$0xff]   ;;  %v1334_v44 = vld [vmem:[%s1728_s0 + $0x68] ss:$16 sps:$4 sm:$0xff]   ;;  %v1338_v45 = vld [vmem:[%s1728_s0 + $0x8c] ss:$16 sps:$4 sm:$0xff]  }
  0x10   :  { %1132 = vmatpush3.bf16.msra.mxu0 %v1297_v12  ;;  %548 = vmatprep.subr.bf16.mxu1 %v1375_v0  ;;  %v1337_v46 = vld [vmem:[%s1728_s0 + $0x80] ss:$16 sps:$4 sm:$0xff]   ;;  %v1341_v47 = vld [vmem:[%s1728_s0 + $0xa4] ss:$16 sps:$4 sm:$0xff]   ;;  %v1340_v48 = vld [vmem:[%s1728_s0 + $0x88] ss:$16 sps:$4 sm:$0xff]  }
  0x11   :  { %1133 = vmatprep.subr.bf16.mxu0 %v1298_v13  ;;  %v1344_v49 = vld [vmem:[%s1728_s0 + $0xac] ss:$16 sps:$4 sm:$0xff]   ;;  %v1343_v50 = vld [vmem:[%s1728_s0 + $0xa0] ss:$16 sps:$4 sm:$0xff]   ;;  %v1347_v51 = vld [vmem:[%s1728_s0 + $0xc4] ss:$16 sps:$4 sm:$0xff]  }
  0x12   :  { %v1346_v52 = vld [vmem:[%s1728_s0 + $0xa8] ss:$16 sps:$4 sm:$0xff]   ;;  %v1350_v53 = vld [vmem:[%s1728_s0 + $0xcc] ss:$16 sps:$4 sm:$0xff]   ;;  %v1349_v54 = vld [vmem:[%s1728_s0 + $0xc0] ss:$16 sps:$4 sm:$0xff]  }
  0x13   :  { %549 = vmatpush1.bf16.msra.mxu1 %v1299_v14  ;;  %v1353_v55 = vld [vmem:[%s1728_s0 + $0xe4] ss:$16 sps:$4 sm:$0xff]   ;;  %v1352_v56 = vld [vmem:[%s1728_s0 + $0xc8] ss:$16 sps:$4 sm:$0xff]   ;;  %v1356_v57 = vld [vmem:[%s1728_s0 + $0xec] ss:$16 sps:$4 sm:$0xff]  }
  0x14   :  { %1134 = vmatpush3.bf16.msra.mxu0 %v1300_v15  ;;  %550 = vmatprep.subr.bf16.mxu1 %v1375_v0  ;;  %v1355_v58 = vld [vmem:[%s1728_s0 + $0xe0] ss:$16 sps:$4 sm:$0xff]   ;;  %v1358_v59 = vld [vmem:[%s1728_s0 + $0xe8] ss:$16 sps:$4 sm:$0xff]  }
  0x15   :  { %1135 = vmatprep.subr.bf16.mxu0 %v1301_v16  ;;  %v1361_v60 = vld [vmem:[%s1729_s3 + $0x28] sm:$0xff]   ;;  %v1362_v61 = vld [vmem:[%s1729_s3 + $0x20] sm:$0xff]   ;;  %v1363_v62 = vld [vmem:[%s1729_s3 + $0x18] sm:$0xff]  }
  0x16   :  { %v1364_v63 = vld [vmem:[%s1729_s3 + $0x10] sm:$0xff]   ;;  %v1366_v1 = vld [vmem:[%s1729_s3] sm:$0xff]   ;;  %v1367_v2 = vld [vmem:[%s1730_s5 + $0x38] sm:$0xff]  }
  0x17   :  { %551 = vmatpush1.bf16.msra.mxu1 %v1302_v17  ;;  %v1368_v3 = vld [vmem:[%s1730_s5 + $0x30] sm:$0xff]   ;;  %v1369_v4 = vld [vmem:[%s1730_s5 + $0x28] sm:$0xff]   ;;  %v1370_v5 = vld [vmem:[%s1730_s5 + $0x20] sm:$0xff]  }
  0x18   :  { %1136 = vmatpush3.bf16.msra.mxu0 %v1303_v18  ;;  %552 = vmatprep.subr.bf16.mxu1 %v1375_v0  ;;  %v1371_v6 = vld [vmem:[%s1730_s5 + $0x18] sm:$0xff]   ;;  %v1646_v9 = vld [vmem:[%s1731_s2] ss:$0 sm:$0xff] }
  0x19   :  { %1137 = vmatprep.subr.bf16.mxu0 %v1304_v19 }
  0x1b   :  { %553 = vmatpush1.bf16.msra.mxu1 %v1305_v20 }
  0x1c   :  { %1138 = vmatpush3.bf16.msra.mxu0 %v1306_v21  ;;  %554 = vmatprep.subr.bf16.mxu1 %v1375_v0 }
  0x1d   :  { %1139 = vmatprep.subr.bf16.mxu0 %v1307_v22 }
  0x1f   :  { %555 = vmatpush1.bf16.msra.mxu1 %v1308_v24 }
  0x20   :  { %1140 = vmatpush3.bf16.msra.mxu0 %v1309_v26  ;;  %570 = vmatprep.subr.bf16.mxu1 %v1375_v0  ;;  %v1365_v0 = vld [vmem:[%s1729_s3 + $0x8] sm:$0xff]  }
  0x21   :  { %1221 = vmatprep.subr.bf16.mxu0 %v1359_v38 }
  0x23   :  { %476 = vmatmul.mubr.bf16.vlgmr.msra.gmra.mxu0 %v1310_v27  ;;  %571 = vmatpush2.bf16.msra.mxu1 %v1313_v28 }
  0x24   :  { %483 = vmatprep.mubr.bf16.mxu0 %v1317_v29  ;;  %1222 = vmatpush3.bf16.msra.mxu0 %v1359_v38 }
  0x25   :  { %1223 = vmatprep.subr.bf16.mxu0 %v1360_v40  ;;  %1253 = vmatprep.subr.bf16.mxu1 %v1367_v2 }
  0x26   :  { %573 = vmatmul.mubr.bf16.vlgmr.msra.gmra.mxu1 %v1314_v30 }
  0x27   :  { %1100 = vmatprep.mubr.msk.bf16.mxu1 %vm418_vm0, %v1320_v31  ;;  %1254 = vmatpush3.bf16.msra.mxu1 %v1367_v2 }
  0x28   :  { %1224 = vmatpush3.bf16.msra.mxu0 %v1360_v40  ;;  %1255 = vmatprep.subr.bf16.mxu1 %v1368_v3 }
  0x29   :  { %1225 = vmatprep.subr.bf16.mxu0 %v1361_v60 }
  0x2b   :  { %484 = vmatmul.mubr.bf16.gmra.mxu0 %v1319_v32  ;;  %1256 = vmatpush3.bf16.msra.mxu1 %v1368_v3 }
  0x2c   :  { %491 = vmatprep.mubr.bf16.mxu0 %v1323_v33  ;;  %1226 = vmatpush3.bf16.msra.mxu0 %v1361_v60 }
  0x2d   :  { %1227 = vmatprep.subr.bf16.mxu0 %v1362_v61  ;;  %1257 = vmatprep.subr.bf16.mxu1 %v1369_v4 }
  0x2e   :  { %581 = vmatmul.mubr.bf16.gmra.mxu1 %v1322_v34 }
  0x2f   :  { %1101 = vmatprep.mubr.msk.bf16.mxu1 %vm418_vm0, %v1326_v35  ;;  %1258 = vmatpush3.bf16.msra.mxu1 %v1369_v4 }
  0x30   :  { %1228 = vmatpush3.bf16.msra.mxu0 %v1362_v61  ;;  %1259 = vmatprep.subr.bf16.mxu1 %v1370_v5 }
  0x31   :  { %1229 = vmatprep.subr.bf16.mxu0 %v1363_v62 }
  0x33   :  { %492 = vmatmul.mubr.bf16.gmra.mxu0 %v1325_v36  ;;  %1260 = vmatpush3.bf16.msra.mxu1 %v1370_v5 }
  0x34   :  { %499 = vmatprep.mubr.bf16.mxu0 %v1329_v37  ;;  %1230 = vmatpush3.bf16.msra.mxu0 %v1363_v62 }
  0x35   :  { %1231 = vmatprep.subr.bf16.mxu0 %v1364_v63  ;;  %1261 = vmatprep.subr.bf16.mxu1 %v1371_v6 }
  0x36   :  { %589 = vmatmul.mubr.bf16.gmra.mxu1 %v1328_v39 }
  0x37   :  { %1102 = vmatprep.mubr.msk.bf16.mxu1 %vm418_vm0, %v1332_v41  ;;  %1262 = vmatpush3.bf16.msra.mxu1 %v1371_v6 }
  0x38   :  { %1232 = vmatpush3.bf16.msra.mxu0 %v1364_v63 }
  0x39   :  { %1233 = vmatprep.subr.bf16.mxu0 %v1365_v0 }
  0x3b   :  { %500 = vmatmul.mubr.bf16.gmra.mxu0 %v1331_v42 }
  0x3c   :  { %507 = vmatprep.mubr.bf16.mxu0 %v1335_v43  ;;  %1234 = vmatpush3.bf16.msra.mxu0 %v1365_v0 }
  0x3d   :  { %1235 = vmatprep.subr.bf16.mxu0 %v1366_v1 }
  0x3e   :  { %597 = vmatmul.mubr.bf16.gmra.mxu1 %v1334_v44 }
  0x3f   :  { %1103 = vmatprep.mubr.msk.bf16.mxu1 %vm418_vm0, %v1338_v45 }
  0x40   :  { %1236 = vmatpush3.bf16.msra.mxu0 %v1366_v1 }
  0x43   :  { %508 = vmatmul.mubr.bf16.gmra.mxu0 %v1337_v46 }
  0x44   :  { %515 = vmatprep.mubr.bf16.mxu0 %v1341_v47 }
  0x46   :  { %605 = vmatmul.mubr.bf16.gmra.mxu1 %v1340_v48 }
  0x47   :  { %1104 = vmatprep.mubr.msk.bf16.mxu1 %vm418_vm0, %v1344_v49 }
  0x4b   :  { %516 = vmatmul.mubr.bf16.gmra.mxu0 %v1343_v50 }
  0x4c   :  { %523 = vmatprep.mubr.bf16.mxu0 %v1347_v51 }
  0x4e   :  { %613 = vmatmul.mubr.bf16.gmra.mxu1 %v1346_v52 }
  0x4f   :  { %1105 = vmatprep.mubr.msk.bf16.mxu1 %vm418_vm0, %v1350_v53 }
  0x53   :  { %524 = vmatmul.mubr.bf16.gmra.mxu0 %v1349_v54 }
  0x54   :  { %531 = vmatprep.mubr.bf16.mxu0 %v1353_v55 }
  0x56   :  { %621 = vmatmul.mubr.bf16.gmra.mxu1 %v1352_v56 }
  0x57   :  { %1106 = vmatprep.mubr.msk.bf16.mxu1 %vm418_vm0, %v1356_v57 }
  0x5b   :  { %532 = vmatmul.mubr.bf16.gmra.mxu0 %v1355_v58 }
  0x5e   :  { %629 = vmatmul.mubr.bf16.gmra.mxu1 %v1358_v59 }
  0xe3   :  { %v1141_v7 = vpop.f32.mrf.mxu0 }
  0xe5   :  { %v1142_v8 = vpop.f32.mrf.mxu0 }
  0xe6   :  { %v1143_v10 = vadd.f32 %v1142_v8, %v1141_v7  ;;  %v574_v11 = vpop.f32.mrf.mxu1 }
  0xe7   :  { %v1144_v12 = vpop.f32.mrf.mxu0 }
  0xe8   :  { %v478_v13 = vadd.f32 %v1143_v10, %v1646_v9  ;;  %v576_v14 = vpop.f32.mrf.mxu1 }
  0xe9   :  { %v1145_v15 = vpop.f32.mrf.mxu0 }
  0xea   :  { %v1146_v16 = vadd.f32 %v1145_v15, %v1144_v12  ;;  %v577_v17 = vpop.f32.mrf.mxu1  ;;  %v575_v19 = vadd.f32 %v574_v11, %v478_v13 }
  0xeb   :  { %v1147_v18 = vpop.f32.mrf.mxu0 }
  0xec   :  { %v481_v20 = vadd.f32 %v1146_v16, %v1646_v9  ;;  %v579_v21 = vpop.f32.mrf.mxu1  ;;  %v637_v27 = vmax.f32 %v575_v19, 0.0 }
  0xed   :  { %v1148_v22 = vpop.f32.mrf.mxu0 }
  0xee   :  { %v578_v23 = vadd.f32 %v577_v17, %v481_v20  ;;  %v1149_v24 = vadd.f32 %v1148_v22, %v1147_v18  ;;  %v582_v25 = vpop.f32.mrf.mxu1 }
  0xef   :  { %v1150_v26 = vpop.f32.mrf.mxu0 }
  0xf0   :  { %v638_v28 = vmax.f32 %v578_v23, 0.0  ;;  %v486_v29 = vadd.f32 %v1149_v24, %v1646_v9  ;;  %v584_v30 = vpop.f32.mrf.mxu1 }
  0xf1   :  { %v1151_v31 = vpop.f32.mrf.mxu0 }
  0xf2   :  { %v653_v32 = vpack.c.bf16 %v638_v28, %v637_v27  ;;  %v1152_v33 = vadd.f32 %v1151_v31, %v1150_v26  ;;  %v585_v34 = vpop.f32.mrf.mxu1  ;;  %v583_v36 = vadd.f32 %v582_v25, %v486_v29 }
  0xf3   :  { %v1153_v35 = vpop.f32.mrf.mxu0 }
  0xf4   :  { %v489_v37 = vadd.f32 %v1152_v33, %v1646_v9  ;;  %v587_v38 = vpop.f32.mrf.mxu1  ;;  %1237 = vmatprep.mubr.bf16.mxu0 %v653_v32  ;;  %v639_v44 = vmax.f32 %v583_v36, 0.0 }
  0xf5   :  { %v1154_v39 = vpop.f32.mrf.mxu0 }
  0xf6   :  { %v586_v40 = vadd.f32 %v585_v34, %v489_v37  ;;  %v1155_v41 = vadd.f32 %v1154_v39, %v1153_v35  ;;  %v590_v42 = vpop.f32.mrf.mxu1 }
  0xf7   :  { %v1156_v43 = vpop.f32.mrf.mxu0 }
  0xf8   :  { %v640_v45 = vmax.f32 %v586_v40, 0.0  ;;  %v494_v46 = vadd.f32 %v1155_v41, %v1646_v9  ;;  %v592_v47 = vpop.f32.mrf.mxu1 }
  0xf9   :  { %v1157_v48 = vpop.f32.mrf.mxu0 }
  0xfa   :  { %v654_v49 = vpack.c.bf16 %v640_v45, %v639_v44  ;;  %v1158_v50 = vadd.f32 %v1157_v48, %v1156_v43  ;;  %v593_v51 = vpop.f32.mrf.mxu1  ;;  %v591_v53 = vadd.f32 %v590_v42, %v494_v46 }
  0xfb   :  { %v1159_v52 = vpop.f32.mrf.mxu0 }
  0xfc   :  { %v497_v54 = vadd.f32 %v1158_v50, %v1646_v9  ;;  %v595_v55 = vpop.f32.mrf.mxu1  ;;  %1238 = vmatmul.mubr.bf16.vlgmr.msra.gmra.mxu0 %v654_v49  ;;  %v641_v61 = vmax.f32 %v591_v53, 0.0 }
  0xfd   :  { %v1160_v56 = vpop.f32.mrf.mxu0 }
  0xfe   :  { %v594_v57 = vadd.f32 %v593_v51, %v497_v54  ;;  %v1161_v58 = vadd.f32 %v1160_v56, %v1159_v52  ;;  %v598_v59 = vpop.f32.mrf.mxu1 }
  0xff   :  { %v1162_v60 = vpop.f32.mrf.mxu0 }
 0x100   :  { %v642_v62 = vmax.f32 %v594_v57, 0.0  ;;  %v502_v63 = vadd.f32 %v1161_v58, %v1646_v9  ;;  %v600_v0 = vpop.f32.mrf.mxu1 }
 0x101   :  { %v1163_v1 = vpop.f32.mrf.mxu0 }
 0x102   :  { %v655_v2 = vpack.c.bf16 %v642_v62, %v641_v61  ;;  %v1164_v3 = vadd.f32 %v1163_v1, %v1162_v60  ;;  %v601_v4 = vpop.f32.mrf.mxu1  ;;  %v599_v6 = vadd.f32 %v598_v59, %v502_v63 }
 0x103   :  { %v1165_v5 = vpop.f32.mrf.mxu0 }
 0x104   :  { %v505_v7 = vadd.f32 %v1164_v3, %v1646_v9  ;;  %v603_v8 = vpop.f32.mrf.mxu1  ;;  %1241 = vmatprep.mubr.bf16.mxu0 %v655_v2  ;;  %v643_v15 = vmax.f32 %v599_v6, 0.0 }
 0x105   :  { %v1166_v10 = vpop.f32.mrf.mxu0 }
 0x106   :  { %v602_v11 = vadd.f32 %v601_v4, %v505_v7  ;;  %v1167_v12 = vadd.f32 %v1166_v10, %v1165_v5  ;;  %v606_v13 = vpop.f32.mrf.mxu1 }
 0x107   :  { %v1168_v14 = vpop.f32.mrf.mxu0 }
 0x108   :  { %v644_v16 = vmax.f32 %v602_v11, 0.0  ;;  %v510_v17 = vadd.f32 %v1167_v12, %v1646_v9  ;;  %v608_v18 = vpop.f32.mrf.mxu1 }
 0x109   :  { %v1169_v19 = vpop.f32.mrf.mxu0  ;;  %v1372_v18 = vld [vmem:[%s1730_s5 + $0x10] sm:$0xff]  }
 0x10a   :  { %v656_v20 = vpack.c.bf16 %v644_v16, %v643_v15  ;;  %v1170_v21 = vadd.f32 %v1169_v19, %v1168_v14  ;;  %v609_v22 = vpop.f32.mrf.mxu1  ;;  %v607_v24 = vadd.f32 %v606_v13, %v510_v17  ;;  %1263 = vmatprep.subr.bf16.mxu1 %v1372_v18  ;;  %v1373_v19 = vld [vmem:[%s1730_s5 + $0x8] sm:$0xff]  }
 0x10b   :  { %v1171_v23 = vpop.f32.mrf.mxu0  ;;  %1264 = vmatpush3.bf16.msra.mxu1 %v1372_v18 }
 0x10c   :  { %v513_v25 = vadd.f32 %v1170_v21, %v1646_v9  ;;  %v611_v26 = vpop.f32.mrf.mxu1  ;;  %1242 = vmatmul.mubr.bf16.gmra.mxu0 %v656_v20  ;;  %v645_v32 = vmax.f32 %v607_v24, 0.0  ;;  %1265 = vmatprep.subr.bf16.mxu1 %v1373_v19 }
 0x10d   :  { %v1172_v27 = vpop.f32.mrf.mxu0 }
 0x10e   :  { %v610_v28 = vadd.f32 %v609_v22, %v513_v25  ;;  %v1173_v29 = vadd.f32 %v1172_v27, %v1171_v23  ;;  %v614_v30 = vpop.f32.mrf.mxu1  ;;  %v1107_v22 = vld [vmem:[%s1732_s4] ss:$0 sm:$0xff] }
 0x10f   :  { %v1174_v31 = vpop.f32.mrf.mxu0  ;;  %1266 = vmatpush3.bf16.msra.mxu1 %v1373_v19 }
 0x110   :  { %v646_v33 = vmax.f32 %v610_v28, 0.0  ;;  %v518_v34 = vadd.f32 %v1173_v29, %v1646_v9  ;;  %v616_v35 = vpop.f32.mrf.mxu1 }
 0x111   :  { %v1175_v36 = vpop.f32.mrf.mxu0 }
 0x112   :  { %v657_v37 = vpack.c.bf16 %v646_v33, %v645_v32  ;;  %v1176_v38 = vadd.f32 %v1175_v36, %v1174_v31  ;;  %v617_v39 = vpop.f32.mrf.mxu1  ;;  %v615_v41 = vadd.f32 %v614_v30, %v518_v34 }
 0x113   :  { %v1177_v40 = vpop.f32.mrf.mxu0 }
 0x114   :  { %v521_v42 = vadd.f32 %v1176_v38, %v1646_v9  ;;  %v619_v43 = vpop.f32.mrf.mxu1  ;;  %1245 = vmatprep.mubr.bf16.mxu0 %v657_v37  ;;  %v647_v49 = vmax.f32 %v615_v41, 0.0 }
 0x115   :  { %v1178_v44 = vpop.f32.mrf.mxu0 }
 0x116   :  { %v618_v45 = vadd.f32 %v617_v39, %v521_v42  ;;  %v1179_v46 = vadd.f32 %v1178_v44, %v1177_v40  ;;  %v622_v47 = vpop.f32.mrf.mxu1 }
 0x117   :  { %v1180_v48 = vpop.f32.mrf.mxu0 }
 0x118   :  { %v648_v50 = vmax.f32 %v618_v45, 0.0  ;;  %v526_v51 = vadd.f32 %v1179_v46, %v1646_v9  ;;  %v624_v52 = vpop.f32.mrf.mxu1 }
 0x119   :  { %v1181_v53 = vpop.f32.mrf.mxu0 }
 0x11a   :  { %v658_v54 = vpack.c.bf16 %v648_v50, %v647_v49  ;;  %v1182_v55 = vadd.f32 %v1181_v53, %v1180_v48  ;;  %v625_v56 = vpop.f32.mrf.mxu1  ;;  %v623_v58 = vadd.f32 %v622_v47, %v526_v51 }
 0x11b   :  { %v1183_v57 = vpop.f32.mrf.mxu0 }
 0x11c   :  { %v529_v59 = vadd.f32 %v1182_v55, %v1646_v9  ;;  %v627_v60 = vpop.f32.mrf.mxu1  ;;  %1246 = vmatmul.mubr.bf16.gmra.mxu0 %v658_v54  ;;  %v649_v2 = vmax.f32 %v623_v58, 0.0 }
 0x11d   :  { %v1184_v61 = vpop.f32.mrf.mxu0 }
 0x11e   :  { %v626_v62 = vadd.f32 %v625_v56, %v529_v59  ;;  %v1185_v63 = vadd.f32 %v1184_v61, %v1183_v57  ;;  %v630_v0 = vpop.f32.mrf.mxu1 }
 0x11f   :  { %v1186_v1 = vpop.f32.mrf.mxu0 }
 0x120   :  { %v650_v3 = vmax.f32 %v626_v62, 0.0  ;;  %v534_v4 = vadd.f32 %v1185_v63, %v1646_v9  ;;  %v632_v5 = vpop.f32.mrf.mxu1 }
 0x121   :  { %v1187_v6 = vpop.f32.mrf.mxu0 }
 0x122   :  { %v659_v7 = vpack.c.bf16 %v650_v3, %v649_v2  ;;  %v1188_v8 = vadd.f32 %v1187_v6, %v1186_v1  ;;  %v633_v10 = vpop.f32.mrf.mxu1  ;;  %v631_v11 = vadd.f32 %v630_v0, %v534_v4 }
 0x124   :  { %v537_v12 = vadd.f32 %v1188_v8, %v1646_v9  ;;  %v635_v13 = vpop.f32.mrf.mxu1  ;;  %1249 = vmatprep.mubr.bf16.mxu0 %v659_v7  ;;  %v651_v15 = vmax.f32 %v631_v11, 0.0  ;;  %v1374_v9 = vld [vmem:[%s1730_s5] sm:$0xff]  }
 0x125   :  { %1267 = vmatprep.subr.bf16.mxu1 %v1374_v9 }
 0x126   :  { %v634_v14 = vadd.f32 %v633_v10, %v537_v12  ;;  %1268 = vmatpush3.bf16.msra.mxu1 %v1374_v9 }
 0x128   :  { %v652_v16 = vmax.f32 %v634_v14, 0.0  ;;  %v1116_v14 = vld [vmem:[%s1733_s6] ss:$0 sm:$0xff] }
 0x12a   :  { %v660_v17 = vpack.c.bf16 %v652_v16, %v651_v15 }
 0x12c   :  { %1250 = vmatmul.mubr.bf16.gmra.mxu0 %v660_v17 }
 0x1bc   :  { %v1239_v20 = vpop.f32.mrf.mxu0 }
 0x1bd   :  { %v775_v26 = vadd.f32 %v1239_v20, %v1107_v22 }
 0x1be   :  { %v766_v21 = vpop.f32.mrf.mxu0 }
 0x1bf   :  { %v767_v24 = vadd.f32 %v1107_v22, %v766_v21  ;;  %v831_v32 = vmax.f32 %v775_v26, 0.0 }
 0x1c0   :  { %v1240_v23 = vpop.f32.mrf.mxu0 }
 0x1c1   :  { %v778_v25 = vadd.f32 %v1240_v23, %v1107_v22  ;;  %v829_v30 = vmax.f32 %v767_v24, 0.0 }
 0x1c2   :  { %v769_v27 = vpop.f32.mrf.mxu0 }
 0x1c3   :  { %v770_v28 = vadd.f32 %v1107_v22, %v769_v27  ;;  %v832_v29 = vmax.f32 %v778_v25, 0.0 }
 0x1c5   :  { %v830_v31 = vmax.f32 %v770_v28, 0.0  ;;  %v846_v34 = vpack.c.bf16 %v832_v29, %v831_v32 }
 0x1c7   :  { %v845_v33 = vpack.c.bf16 %v830_v31, %v829_v30 }
 0x1c9   :  { %1269 = vmatprep.mubr.bf16.mxu1 %v845_v33 }
 0x1ca   :  { %1270 = vmatmul.mubr.bf16.vlgmr.msra.gmra.mxu1 %v846_v34 }
 0x1cc   :  { %v1243_v35 = vpop.f32.mrf.mxu0 }
 0x1cd   :  { %v791_v40 = vadd.f32 %v1243_v35, %v1107_v22 }
 0x1ce   :  { %v782_v36 = vpop.f32.mrf.mxu0 }
 0x1cf   :  { %v783_v38 = vadd.f32 %v1107_v22, %v782_v36  ;;  %v835_v46 = vmax.f32 %v791_v40, 0.0 }
 0x1d0   :  { %v1244_v37 = vpop.f32.mrf.mxu0 }
 0x1d1   :  { %v794_v39 = vadd.f32 %v1244_v37, %v1107_v22  ;;  %v833_v44 = vmax.f32 %v783_v38, 0.0 }
 0x1d2   :  { %v785_v41 = vpop.f32.mrf.mxu0 }
 0x1d3   :  { %v786_v42 = vadd.f32 %v1107_v22, %v785_v41  ;;  %v836_v43 = vmax.f32 %v794_v39, 0.0 }
 0x1d5   :  { %v834_v45 = vmax.f32 %v786_v42, 0.0  ;;  %v848_v48 = vpack.c.bf16 %v836_v43, %v835_v46 }
 0x1d7   :  { %v847_v47 = vpack.c.bf16 %v834_v45, %v833_v44 }
 0x1d9   :  { %1273 = vmatprep.mubr.bf16.mxu1 %v847_v47 }
 0x1da   :  { %1274 = vmatmul.mubr.bf16.gmra.mxu1 %v848_v48 }
 0x1dc   :  { %v1247_v49 = vpop.f32.mrf.mxu0 }
 0x1dd   :  { %v807_v54 = vadd.f32 %v1247_v49, %v1107_v22 }
 0x1de   :  { %v798_v50 = vpop.f32.mrf.mxu0 }
 0x1df   :  { %v799_v52 = vadd.f32 %v1107_v22, %v798_v50  ;;  %v839_v60 = vmax.f32 %v807_v54, 0.0 }
 0x1e0   :  { %v1248_v51 = vpop.f32.mrf.mxu0 }
 0x1e1   :  { %v810_v53 = vadd.f32 %v1248_v51, %v1107_v22  ;;  %v837_v58 = vmax.f32 %v799_v52, 0.0 }
 0x1e2   :  { %v801_v55 = vpop.f32.mrf.mxu0 }
 0x1e3   :  { %v802_v56 = vadd.f32 %v1107_v22, %v801_v55  ;;  %v840_v57 = vmax.f32 %v810_v53, 0.0 }
 0x1e5   :  { %v838_v59 = vmax.f32 %v802_v56, 0.0  ;;  %v850_v62 = vpack.c.bf16 %v840_v57, %v839_v60 }
 0x1e7   :  { %v849_v61 = vpack.c.bf16 %v838_v59, %v837_v58 }
 0x1e9   :  { %1277 = vmatprep.mubr.bf16.mxu1 %v849_v61 }
 0x1ea   :  { %1278 = vmatmul.mubr.bf16.gmra.mxu1 %v850_v62 }
 0x1ec   :  { %v1251_v63 = vpop.f32.mrf.mxu0 }
 0x1ed   :  { %v823_v4 = vadd.f32 %v1251_v63, %v1107_v22 }
 0x1ee   :  { %v814_v0 = vpop.f32.mrf.mxu0 }
 0x1ef   :  { %v815_v2 = vadd.f32 %v1107_v22, %v814_v0  ;;  %v843_v11 = vmax.f32 %v823_v4, 0.0 }
 0x1f0   :  { %v1252_v1 = vpop.f32.mrf.mxu0 }
 0x1f1   :  { %v826_v3 = vadd.f32 %v1252_v1, %v1107_v22  ;;  %v841_v8 = vmax.f32 %v815_v2, 0.0 }
 0x1f2   :  { %v817_v5 = vpop.f32.mrf.mxu0 }
 0x1f3   :  { %v818_v6 = vadd.f32 %v1107_v22, %v817_v5  ;;  %v844_v7 = vmax.f32 %v826_v3, 0.0 }
 0x1f5   :  { %v842_v10 = vmax.f32 %v818_v6, 0.0  ;;  %v852_v13 = vpack.c.bf16 %v844_v7, %v843_v11 }
 0x1f7   :  { %v851_v12 = vpack.c.bf16 %v842_v10, %v841_v8 }
 0x1f9   :  { %1281 = vmatprep.mubr.bf16.mxu1 %v851_v12 }
 0x1fa   :  { %1282 = vmatmul.mubr.bf16.gmra.mxu1 %v852_v13 }
 0x28a   :  { %v1271_v15 = vpop.f32.mrf.mxu1 }
 0x28b   :  { %v967_v16 = vadd.f32 %v1271_v15, %v1116_v14 }
 0x28c   :  { %v958_v17 = vpop.f32.mrf.mxu1 }
 0x28d   :  { %1023 = vst [vmem:[%s1734_s7 + $0x10] sm:$0xff] %v967_v16  ;;  %v959_v18 = vadd.f32 %v1116_v14, %v958_v17 }
 0x28e   :  { %v1272_v19 = vpop.f32.mrf.mxu1 }
 0x28f   :  { %1021 = vst [vmem:[%s1734_s7] sm:$0xff] %v959_v18  ;;  %v970_v9 = vadd.f32 %v1272_v19, %v1116_v14 }
 0x290   :  { %v961_v20 = vpop.f32.mrf.mxu1 }
 0x291   :  { %1024 = vst [vmem:[%s1734_s7 + $0x18] sm:$0xff] %v970_v9  ;;  %v962_v21 = vadd.f32 %v1116_v14, %v961_v20 }
 0x293   :  { %1022 = vst [vmem:[%s1734_s7 + $0x8] sm:$0xff] %v962_v21 }
 0x29a   :  { %v1275_v22 = vpop.f32.mrf.mxu1 }
 0x29b   :  { %v983_v23 = vadd.f32 %v1275_v22, %v1116_v14 }
 0x29c   :  { %v974_v24 = vpop.f32.mrf.mxu1 }
 0x29d   :  { %1027 = vst [vmem:[%s1734_s7 + $0x30] sm:$0xff] %v983_v23  ;;  %v975_v25 = vadd.f32 %v1116_v14, %v974_v24 }
 0x29e   :  { %v1276_v26 = vpop.f32.mrf.mxu1 }
 0x29f   :  { %1025 = vst [vmem:[%s1734_s7 + $0x20] sm:$0xff] %v975_v25  ;;  %v986_v27 = vadd.f32 %v1276_v26, %v1116_v14 }
 0x2a0   :  { %v977_v28 = vpop.f32.mrf.mxu1 }
 0x2a1   :  { %1028 = vst [vmem:[%s1734_s7 + $0x38] sm:$0xff] %v986_v27  ;;  %v978_v29 = vadd.f32 %v1116_v14, %v977_v28 }
 0x2a3   :  { %1026 = vst [vmem:[%s1734_s7 + $0x28] sm:$0xff] %v978_v29 }
 0x2aa   :  { %v1279_v30 = vpop.f32.mrf.mxu1 }
 0x2ab   :  { %v999_v31 = vadd.f32 %v1279_v30, %v1116_v14 }
 0x2ac   :  { %v990_v32 = vpop.f32.mrf.mxu1 }
 0x2ad   :  { %1031 = vst [vmem:[%s1734_s7 + $0x50] sm:$0xff] %v999_v31  ;;  %v991_v33 = vadd.f32 %v1116_v14, %v990_v32 }
 0x2ae   :  { %v1280_v34 = vpop.f32.mrf.mxu1 }
 0x2af   :  { %1029 = vst [vmem:[%s1734_s7 + $0x40] sm:$0xff] %v991_v33  ;;  %v1002_v35 = vadd.f32 %v1280_v34, %v1116_v14 }
 0x2b0   :  { %v993_v36 = vpop.f32.mrf.mxu1 }
 0x2b1   :  { %1032 = vst [vmem:[%s1734_s7 + $0x58] sm:$0xff] %v1002_v35  ;;  %v994_v37 = vadd.f32 %v1116_v14, %v993_v36 }
 0x2b3   :  { %1030 = vst [vmem:[%s1734_s7 + $0x48] sm:$0xff] %v994_v37 }
 0x2ba   :  { %v1283_v38 = vpop.f32.mrf.mxu1 }
 0x2bb   :  { %v1015_v39 = vadd.f32 %v1283_v38, %v1116_v14 }
 0x2bc   :  { %v1006_v40 = vpop.f32.mrf.mxu1 }
 0x2bd   :  { %1035 = vst [vmem:[%s1734_s7 + $0x70] sm:$0xff] %v1015_v39  ;;  %v1007_v41 = vadd.f32 %v1116_v14, %v1006_v40 }
 0x2be   :  { %v1284_v42 = vpop.f32.mrf.mxu1 }
 0x2bf   :  { %1033 = vst [vmem:[%s1734_s7 + $0x60] sm:$0xff] %v1007_v41  ;;  %v1018_v43 = vadd.f32 %v1284_v42, %v1116_v14 }
 0x2c0   :  { %v1009_v44 = vpop.f32.mrf.mxu1 }
 0x2c1   :  { %1036 = vst [vmem:[%s1734_s7 + $0x78] sm:$0xff] %v1018_v43  ;;  %v1010_v45 = vadd.f32 %v1116_v14, %v1009_v44 }
 0x2c3   :  { %1034 = vst [vmem:[%s1734_s7 + $0x68] sm:$0xff] %v1010_v45 }

</bundles_post_ra>
